<compile_context>
chip_gen: v6e
topology: v6e:2x2x1
jax: 0.10.0
libtpu: 0.0.40
codegen_flags: <defaults>
</compile_context>

<pallas_src>
import functools

import jax
import jax.numpy as jnp
import numpy as np
from jax import lax
from jax.experimental import pallas as pl
from jax.experimental.pallas import tpu as pltpu

N_ITER_DEFAULT = 30   # f32-equivalent to entmax_bisect's default 50 iterations


def _round_up(x, m):
    return (x + m - 1) // m * m


def _make_entmax_p(alpha):
    """p(z) = clamp(z, 0) ** (1 / (alpha - 1)).  Specialized at trace time when
    the exponent is a small integer so the bisection is pure VPU (no exp/log
    EUP chain).  Returns (p_fn, uses_transcendentals)."""
    inv = 1.0 / (alpha - 1.0)
    n = int(round(inv))
    if abs(inv - n) < 1e-6 and 1 <= n <= 4:
        def p_fn(z):
            z = jnp.maximum(z, 0.0)
            r = z
            for _ in range(n - 1):
                r = r * z
            return r
        return p_fn, False

    def p_fn(z):
        z = jnp.maximum(z, 0.0)
        safe = jnp.maximum(z, 1e-30)
        return jnp.where(z > 0.0, jnp.exp(inv * jnp.log(safe)), 0.0)
    return p_fn, True


def g_att_kernel(c_ref, g_ref, qp_ref, mask_ref, w1_ref, w0_ref, out_ref,
                 *, alpha, n_iter, true_s):
    tb, s, d = c_ref.shape

    # ---- hidden = relu(C @ Wg1^T + (C_target @ Wg2^T + bias)) ----------------
    # One folded MXU matmul; S is padded to the sublane tile in the wrapper so
    # the reshapes are layout-free.
    h = jnp.dot(c_ref[...].reshape(tb * s, d), w1_ref[...],
                preferred_element_type=jnp.float32).reshape(tb, s, d)
    h = jnp.maximum(h + qp_ref[...], 0.0)                       # (TB, S, D) f32

    # ---- score = Wg0(h), masked_fill(mask == 0, -inf) ------------------------
    # VPU mul + lane reduce: an M=1 / N=1 MXU matmul (or a transpose of the
    # full h tile) is the worst MXU shape and carries D-times fewer FLOPs than
    # the Wg1 matmul, so keep it off the MXU entirely.
    score = jnp.sum(h * w0_ref[...], axis=-1)                   # (TB, S) f32
    mask2 = mask_ref[...][:, 0, :]                              # (TB, S)
    score = jnp.where(mask2 == 0.0, -jnp.inf, score)
    # NOTE: a fully-masked row gives a NaN output, matching entmax_bisect on a
    # row of -inf scores (same failure mode as the PyTorch reference).

    # ---- entmax_bisect along S (lane axis), batch on sublanes ----------------
    am1 = alpha - 1.0
    p_fn, _ = _make_entmax_p(alpha)
    gp_1_over_d = (1.0 / true_s) ** am1      # _gp(1/d, alpha), trace-time const

    X = score * am1
    max_val = jnp.max(X, axis=-1, keepdims=True)                # (TB, 1)
    tau_lo = max_val - 1.0                                      # _gp(1, alpha)=1
    tau_hi = max_val - gp_1_over_d
    f_lo = jnp.sum(p_fn(X - tau_lo), axis=-1, keepdims=True) - 1.0
    dm = tau_hi - tau_lo

    def body(_, carry):
        tau_lo, dm, _tau_m = carry
        dm = dm * 0.5
        tau_m = tau_lo + dm
        f_m = jnp.sum(p_fn(X - tau_m), axis=-1, keepdims=True) - 1.0
        tau_lo = jnp.where((f_m * f_lo) >= 0.0, tau_m, tau_lo)
        return (tau_lo, dm, tau_m)

    _, _, tau_m = lax.fori_loop(0, n_iter, body, (tau_lo, dm, tau_lo),
                                unroll=True)
    p = p_fn(X - tau_m)
    p = p / jnp.sum(p, axis=-1, keepdims=True)                  # ensure_sum_one

    # ---- attention_result = p @ G  (batched MXU, f32 accumulation) -----------
    p3 = p[:, None, :].astype(g_ref.dtype)                      # (TB, 1, S)
    out = jnp.einsum('bqk,bkd->bqd', p3, g_ref[...],
                     preferred_element_type=jnp.float32)        # (TB, 1, D)
    out_ref[...] = out.astype(out_ref.dtype)


# --------------------------- VMEM sizing helpers ------------------------------
def _block_bytes_est(tb, s_pad, d, in_itemsize):
    """Conservative per-grid-step VMEM estimate: double-buffered input/output
    blocks, both copies of the resident Wg1, the f32 hidden intermediate and
    the score / h*w0 temporaries (all rounded to (sublane, 128-lane) tiles)."""
    sub = 16 if in_itemsize < 4 else 8
    lane_d = _round_up(d, 128)
    lane_s = _round_up(s_pad, 128)
    cg = tb * _round_up(s_pad, sub) * lane_d * in_itemsize      # one C or G buffer
    qp = tb * 8 * lane_d * 4                                    # (TB,1,D) padded
    msk = tb * 8 * lane_s * 4                                   # (TB,1,S) padded
    outb = tb * 8 * lane_d * 4                                  # (TB,1,D) padded
    w1 = _round_up(d, sub) * lane_d * in_itemsize
    w0 = 8 * lane_d * 4
    h = tb * _round_up(s_pad, 8) * lane_d * 4                   # f32 hidden
    tmp = h + 6 * tb * max(lane_s, lane_d) * 4                  # h*w0 product + small temps
    return 2 * (2 * cg + qp + msk + outb + w1 + w0) + h + tmp


def _physical_vmem_bytes():
    try:
        return int(pltpu.get_tpu_info().vmem_capacity_bytes)
    except Exception:
        # Fall back to the smallest per-TensorCore VMEM across v5e/v6e/v7x.
        return 64 << 20


def _pick_batch_tile(B, s_pad, d, in_itemsize, tile_budget):
    """Largest divisor of B whose per-step VMEM estimate fits tile_budget.
    Stops once the streamed input block reaches ~8 MiB while an even grid of
    >= 2 steps remains (keeps both v7x TensorCores busy); odd / length-1 grids
    are only accepted while blocks are still tiny."""
    target = 8 << 20
    best = 1
    for tb in range(1, B + 1):
        if B % tb:
            continue
        if _block_bytes_est(tb, s_pad, d, in_itemsize) > tile_budget:
            break
        steps = B // tb
        in_blk = tb * s_pad * d * in_itemsize
        even_grid = steps >= 2 and steps % 2 == 0
        if even_grid or in_blk <= (1 << 20) or tb == B:
            best = tb
        if even_grid and in_blk >= target:
            break
    return best


# ---------------------------------- wrapper -----------------------------------
def g_att(C_target, C, G, alpha, mask, w1, w2, w0, bias_alpha, *,
          n_iter=N_ITER_DEFAULT, batch_tile=None, matmul_dtype=jnp.bfloat16):
    """Pallas TPU forward of G_ATT.  Returns (B, 1, D) float32.

    matmul_dtype controls the streaming dtype of C, G and Wg1 (the kernel is
    HBM-bound, so bf16 halves the dominant traffic); qp, the scores, the
    entmax bisection and all accumulation always stay in float32.
    """
    alpha = float(alpha)
    assert alpha > 1.0, "entmax_bisect kernel assumes alpha > 1"
    B, S, D = C.shape
    cdt = jnp.dtype(matmul_dtype)
    itemsize = cdt.itemsize

    # Hoisted query-side projection: one batched XLA matmul (Wg2 never enters
    # the kernel, halving the resident-weight footprint); always f32.
    qp = (C_target.astype(jnp.float32) @ w2.T.astype(jnp.float32)
          + bias_alpha.astype(jnp.float32)).reshape(B, 1, D)

    # Pad S to the sublane tile so the folded (TB*S, D) @ (D, D) matmul always
    # runs and the in-kernel reshape is layout-free.  Padded rows carry mask=0
    # -> score = -inf -> p = 0, so they never contribute to the output.
    sub = 16 if itemsize < 4 else 8
    S_pad = _round_up(S, sub)
    mask_f = mask.astype(jnp.float32)
    if S_pad != S:
        pad = S_pad - S
        C = jnp.pad(C, ((0, 0), (0, pad), (0, 0)))
        G = jnp.pad(G, ((0, 0), (0, pad), (0, 0)))
        mask_f = jnp.pad(mask_f, ((0, 0), (0, pad)))

    C_in = C.astype(cdt)
    G_in = G.astype(cdt)
    w1_t = w1.T.astype(cdt)                            # (D, D), input-dim first
    w0_row = w0.reshape(1, D).astype(jnp.float32)
    mask3 = mask_f.reshape(B, 1, S_pad)

    # Generation-aware VMEM sizing (v7x: 64 MiB physical per TensorCore,
    # v5e/v6e: 128 MiB).  Never request more than ~3/4 of physical VMEM.
    phys = _physical_vmem_bytes()
    limit_cap = (phys * 3) // 4
    tile_budget = int(limit_cap * 0.8)

    TB = batch_tile if batch_tile is not None else _pick_batch_tile(
        B, S_pad, D, itemsize, tile_budget)
    assert B % TB == 0, "batch_tile must divide the batch size"
    grid = (B // TB,)

    est = _block_bytes_est(TB, S_pad, D, itemsize)
    vmem_limit = int(min(limit_cap, max(est + (8 << 20), 32 << 20)))

    _, uses_eup = _make_entmax_p(alpha)
    flops = (2 * B * S_pad * D * D                 # Wg1 matmul
             + 4 * B * S_pad * D                   # score + weighted sum
             + 10 * (n_iter + 2) * B * S_pad)      # bisection
    transcendentals = (2 * (n_iter + 2) * B * S_pad) if uses_eup else 0
    bytes_accessed = (2 * B * S_pad * D * itemsize          # C + G
                      + B * D * 4 + B * S_pad * 4           # qp + mask
                      + D * D * itemsize + D * 4            # Wg1 + Wg0
                      + B * D * 4)                           # out
    cost = pl.CostEstimate(flops=int(flops),
                           transcendentals=int(transcendentals),
                           bytes_accessed=int(bytes_accessed))

    kernel = functools.partial(g_att_kernel, alpha=alpha, n_iter=int(n_iter),
                               true_s=int(S))

    return pl.pallas_call(
        kernel,
        out_shape=jax.ShapeDtypeStruct((B, 1, D), jnp.float32),
        grid=grid,
        in_specs=[
            pl.BlockSpec((TB, S_pad, D), lambda b: (b, 0, 0)),   # C (keys)
            pl.BlockSpec((TB, S_pad, D), lambda b: (b, 0, 0)),   # G (values)
            pl.BlockSpec((TB, 1, D), lambda b: (b, 0, 0)),       # q-proj + bias
            pl.BlockSpec((TB, 1, S_pad), lambda b: (b, 0, 0)),   # mask
            pl.BlockSpec((D, D), lambda b: (0, 0)),              # Wg1^T (resident)
            pl.BlockSpec((1, D), lambda b: (0, 0)),              # Wg0 row (resident)
        ],
        out_specs=pl.BlockSpec((TB, 1, D), lambda b: (b, 0, 0)),
        compiler_params=pltpu.CompilerParams(
            dimension_semantics=("parallel",),
            vmem_limit_bytes=vmem_limit),
        cost_estimate=cost,
    )(C_in, G_in, qp, mask3, w1_t, w0_row)


# ----------------------------- pure-JAX reference -----------------------------
def _powf_ref(x, y):
    safe = jnp.maximum(x, 1e-30)
    r = jnp.exp(y * jnp.log(safe))
    return jnp.where(x > 0.0, r, 0.0)


def _entmax_bisect_ref(X, alpha, axis, n_iter=50):
    d = X.shape[axis]
    am1 = alpha - 1.0
    inv = 1.0 / am1
    max_val = jnp.max(X, axis=axis, keepdims=True)
    Xs = X * am1
    max_val = max_val * am1
    tau_lo = max_val - 1.0
    tau_hi = max_val - _powf_ref(jnp.float32(1.0 / d), jnp.float32(am1))
    p = lambda z: _powf_ref(jnp.maximum(z, 0.0), inv)
    f_lo = jnp.sum(p(Xs - tau_lo), axis=axis, keepdims=True) - 1.0
    dm = tau_hi - tau_lo
    tau_m = tau_lo
    for _ in range(n_iter):
        dm = dm / 2.0
        tau_m = tau_lo + dm
        p_m = p(Xs - tau_m)
        f_m = jnp.sum(p_m, axis=axis, keepdims=True) - 1.0
        tau_lo = jnp.where(f_m * f_lo >= 0.0, tau_m, tau_lo)
    p_m = p(Xs - tau_m)
    return p_m / jnp.sum(p_m, axis=axis, keepdims=True)


def g_att_ref(C_target, C, G, alpha, mask, w1, w2, w0, bias_alpha):
    q = C_target[:, None, :]
    h = jnp.maximum(C @ w1.T + q @ w2.T + bias_alpha, 0.0)
    score = h @ w0.T                                    # (B, S, 1)
    score = jnp.where(mask[..., None] == 0.0, -jnp.inf, score)
    p = _entmax_bisect_ref(score, alpha, axis=1)
    return jnp.einsum("bsi,bsd->bid", p, G)             # (B, 1, D)


if __name__ == "__main__":
    key = jax.random.PRNGKey(0)
    B, S, E = 2, 8, 16
    D = 2 * E
    ks = jax.random.split(key, 8)

    C_target = jax.random.normal(ks[0], (B, D), jnp.float32)
    C = jax.random.normal(ks[1], (B, S, D), jnp.float32)
    G = jax.random.normal(ks[2], (B, S, D), jnp.float32)
    mask = (jax.random.uniform(ks[3], (B, S)) > 0.25).astype(jnp.float32)
    mask = mask.at[:, 0].set(1.0)          # keep at least one unmasked position
    alpha = 1.5

    scale = 1.0 / np.sqrt(D)
    w1 = jax.random.uniform(ks[4], (D, D), jnp.float32, -scale, scale)  # Wg1
    w2 = jax.random.uniform(ks[5], (D, D), jnp.float32, -scale, scale)  # Wg2
    w0 = jax.random.uniform(ks[6], (1, D), jnp.float32, -scale, scale)  # Wg0
    bias_alpha = jax.random.uniform(ks[7], (D,), jnp.float32, -scale, scale)

    # Default (bf16-streaming) kernel: run once and sanity-check finiteness.
    out_bf16 = g_att(C_target, C, G, alpha, mask, w1, w2, w0, bias_alpha)
    out_bf16 = jax.block_until_ready(out_bf16)
    assert out_bf16.shape == (B, 1, D)
    assert bool(jnp.isfinite(out_bf16).all())

    # f32-streaming kernel: exact-tolerance check against the pure-JAX reference.
    out_f32 = g_att(C_target, C, G, alpha, mask, w1, w2, w0, bias_alpha,
                    matmul_dtype=jnp.float32)
    out_f32 = jax.block_until_ready(out_f32)
    ref = g_att_ref(C_target, C, G, alpha, mask, w1, w2, w0, bias_alpha)
    np.testing.assert_allclose(np.asarray(out_f32), np.asarray(ref),
                               rtol=2e-3, atol=2e-5)
    print("KERNEL_OK")
</pallas_src>

<mosaic_0001>
module attributes {stable_mosaic.version = 11 : i64} {
  func.func @g_att_kernel(%arg0: i32, %arg1: memref<2x16x32xbf16, #tpu.memory_space<vmem>>, %arg2: memref<2x16x32xbf16, #tpu.memory_space<vmem>>, %arg3: memref<2x1x32xf32, #tpu.memory_space<vmem>>, %arg4: memref<2x1x16xf32, #tpu.memory_space<vmem>>, %arg5: memref<32x32xbf16, #tpu.memory_space<vmem>>, %arg6: memref<1x32xf32, #tpu.memory_space<vmem>>, %arg7: memref<2x1x32xf32, #tpu.memory_space<vmem>>) attributes {dimension_semantics = [#tpu.dimension_semantics<parallel>], iteration_bounds = array<i64: 1>, scalar_prefetch = 0 : i64, scratch_operands = 0 : i64, tpu.core_type = #tpu.core_type<tc>, window_params = [{transform_indices = @transform_0, window_bounds = array<i64: 2, 16, 32>}, {transform_indices = @transform_1, window_bounds = array<i64: 2, 16, 32>}, {transform_indices = @transform_2, window_bounds = array<i64: 2, 1, 32>}, {transform_indices = @transform_3, window_bounds = array<i64: 2, 1, 16>}, {pipeline_mode = #tpu.pipeline_mode<synchronous>, transform_indices = @transform_4, window_bounds = array<i64: 32, 32>}, {pipeline_mode = #tpu.pipeline_mode<synchronous>, transform_indices = @transform_5, window_bounds = array<i64: 1, 32>}, {transform_indices = @transform_6, window_bounds = array<i64: 2, 1, 32>}]} {
    %c0 = arith.constant 0 : index
    %c0_0 = arith.constant 0 : index
    %c0_1 = arith.constant 0 : index
    %0 = vector.load %arg1[%c0, %c0_0, %c0_1] : memref<2x16x32xbf16, #tpu.memory_space<vmem>>, vector<2x16x32xbf16>
    %1 = vector.shape_cast %0 : vector<2x16x32xbf16> to vector<32x32xbf16>
    %c0_2 = arith.constant 0 : index
    %c0_3 = arith.constant 0 : index
    %2 = vector.load %arg5[%c0_2, %c0_3] : memref<32x32xbf16, #tpu.memory_space<vmem>>, vector<32x32xbf16>
    %cst = arith.constant dense<0.000000e+00> : vector<32x32xf32>
    %3 = tpu.matmul %1, %2, %cst {dimension_numbers = #tpu.dot_dimension_numbers<[1], [0], [0], [1], [0, 0, 1, 1], [], []>} : vector<32x32xbf16>, vector<32x32xbf16>, vector<32x32xf32> -> vector<32x32xf32>
    %4 = vector.shape_cast %3 : vector<32x32xf32> to vector<2x16x32xf32>
    %c0_4 = arith.constant 0 : index
    %c0_5 = arith.constant 0 : index
    %c0_6 = arith.constant 0 : index
    %5 = vector.load %arg3[%c0_4, %c0_5, %c0_6] : memref<2x1x32xf32, #tpu.memory_space<vmem>>, vector<2x1x32xf32>
    %6 = vector.broadcast %5 : vector<2x1x32xf32> to vector<2x16x32xf32>
    %7 = arith.addf %4, %6 : vector<2x16x32xf32>
    %cst_7 = arith.constant 0.000000e+00 : f32
    %8 = vector.broadcast %cst_7 : f32 to vector<2x16x32xf32>
    %9 = arith.maximumf %7, %8 : vector<2x16x32xf32>
    %c0_8 = arith.constant 0 : index
    %c0_9 = arith.constant 0 : index
    %10 = vector.load %arg6[%c0_8, %c0_9] : memref<1x32xf32, #tpu.memory_space<vmem>>, vector<1x32xf32>
    %11 = vector.shape_cast %10 : vector<1x32xf32> to vector<1x1x32xf32>
    %12 = vector.broadcast %11 : vector<1x1x32xf32> to vector<2x16x32xf32>
    %13 = arith.mulf %9, %12 : vector<2x16x32xf32>
    %cst_10 = arith.constant dense<0.000000e+00> : vector<2x16xf32>
    %14 = vector.multi_reduction <add>, %13, %cst_10 [2] : vector<2x16x32xf32> to vector<2x16xf32>
    %c0_11 = arith.constant 0 : index
    %c0_12 = arith.constant 0 : index
    %c0_13 = arith.constant 0 : index
    %15 = vector.load %arg4[%c0_11, %c0_12, %c0_13] : memref<2x1x16xf32, #tpu.memory_space<vmem>>, vector<2x1x16xf32>
    %16 = vector.shape_cast %15 : vector<2x1x16xf32> to vector<2x16xf32>
    %cst_14 = arith.constant 0.000000e+00 : f32
    %17 = vector.broadcast %cst_14 : f32 to vector<2x16xf32>
    %18 = arith.cmpf oeq, %16, %17 : vector<2x16xf32>
    %cst_15 = arith.constant 0xFF800000 : f32
    %19 = vector.broadcast %cst_15 : f32 to vector<2x16xf32>
    %20 = arith.select %18, %19, %14 : vector<2x16xi1>, vector<2x16xf32>
    %cst_16 = arith.constant 5.000000e-01 : f32
    %21 = vector.broadcast %cst_16 : f32 to vector<2x16xf32>
    %22 = arith.mulf %20, %21 : vector<2x16xf32>
    %cst_17 = arith.constant dense<0xFF800000> : vector<2xf32>
    %23 = vector.multi_reduction <maximumf>, %22, %cst_17 [1] : vector<2x16xf32> to vector<2xf32>
    %24 = vector.shape_cast %23 : vector<2xf32> to vector<2x1xf32>
    %cst_18 = arith.constant 1.000000e+00 : f32
    %25 = vector.broadcast %cst_18 : f32 to vector<2x1xf32>
    %26 = arith.subf %24, %25 : vector<2x1xf32>
    %cst_19 = arith.constant 0.353553385 : f32
    %27 = vector.broadcast %cst_19 : f32 to vector<2x1xf32>
    %28 = arith.subf %24, %27 : vector<2x1xf32>
    %29 = vector.broadcast %26 : vector<2x1xf32> to vector<2x16xf32>
    %30 = arith.subf %22, %29 : vector<2x16xf32>
    %cst_20 = arith.constant 0.000000e+00 : f32
    %31 = vector.broadcast %cst_20 : f32 to vector<2x16xf32>
    %32 = arith.maximumf %30, %31 : vector<2x16xf32>
    %33 = arith.mulf %32, %32 : vector<2x16xf32>
    %cst_21 = arith.constant dense<0.000000e+00> : vector<2xf32>
    %34 = vector.multi_reduction <add>, %33, %cst_21 [1] : vector<2x16xf32> to vector<2xf32>
    %35 = vector.shape_cast %34 : vector<2xf32> to vector<2x1xf32>
    %cst_22 = arith.constant 1.000000e+00 : f32
    %36 = vector.broadcast %cst_22 : f32 to vector<2x1xf32>
    %37 = arith.subf %35, %36 : vector<2x1xf32>
    %38 = arith.subf %28, %26 : vector<2x1xf32>
    %c0_i32 = arith.constant 0 : i32
    %cst_23 = arith.constant 5.000000e-01 : f32
    %39 = vector.broadcast %cst_23 : f32 to vector<2x1xf32>
    %40 = arith.mulf %38, %39 : vector<2x1xf32>
    %41 = arith.addf %26, %40 : vector<2x1xf32>
    %42 = vector.broadcast %41 : vector<2x1xf32> to vector<2x16xf32>
    %43 = arith.subf %22, %42 : vector<2x16xf32>
    %cst_24 = arith.constant 0.000000e+00 : f32
    %44 = vector.broadcast %cst_24 : f32 to vector<2x16xf32>
    %45 = arith.maximumf %43, %44 : vector<2x16xf32>
    %46 = arith.mulf %45, %45 : vector<2x16xf32>
    %cst_25 = arith.constant dense<0.000000e+00> : vector<2xf32>
    %47 = vector.multi_reduction <add>, %46, %cst_25 [1] : vector<2x16xf32> to vector<2xf32>
    %48 = vector.shape_cast %47 : vector<2xf32> to vector<2x1xf32>
    %cst_26 = arith.constant 1.000000e+00 : f32
    %49 = vector.broadcast %cst_26 : f32 to vector<2x1xf32>
    %50 = arith.subf %48, %49 : vector<2x1xf32>
    %51 = arith.mulf %50, %37 : vector<2x1xf32>
    %cst_27 = arith.constant 0.000000e+00 : f32
    %52 = vector.broadcast %cst_27 : f32 to vector<2x1xf32>
    %53 = arith.cmpf oge, %51, %52 : vector<2x1xf32>
    %54 = arith.select %53, %41, %26 : vector<2x1xi1>, vector<2x1xf32>
    %c1_i32 = arith.constant 1 : i32
    %cst_28 = arith.constant 5.000000e-01 : f32
    %55 = vector.broadcast %cst_28 : f32 to vector<2x1xf32>
    %56 = arith.mulf %40, %55 : vector<2x1xf32>
    %57 = arith.addf %54, %56 : vector<2x1xf32>
    %58 = vector.broadcast %57 : vector<2x1xf32> to vector<2x16xf32>
    %59 = arith.subf %22, %58 : vector<2x16xf32>
    %cst_29 = arith.constant 0.000000e+00 : f32
    %60 = vector.broadcast %cst_29 : f32 to vector<2x16xf32>
    %61 = arith.maximumf %59, %60 : vector<2x16xf32>
    %62 = arith.mulf %61, %61 : vector<2x16xf32>
    %cst_30 = arith.constant dense<0.000000e+00> : vector<2xf32>
    %63 = vector.multi_reduction <add>, %62, %cst_30 [1] : vector<2x16xf32> to vector<2xf32>
    %64 = vector.shape_cast %63 : vector<2xf32> to vector<2x1xf32>
    %cst_31 = arith.constant 1.000000e+00 : f32
    %65 = vector.broadcast %cst_31 : f32 to vector<2x1xf32>
    %66 = arith.subf %64, %65 : vector<2x1xf32>
    %67 = arith.mulf %66, %37 : vector<2x1xf32>
    %cst_32 = arith.constant 0.000000e+00 : f32
    %68 = vector.broadcast %cst_32 : f32 to vector<2x1xf32>
    %69 = arith.cmpf oge, %67, %68 : vector<2x1xf32>
    %70 = arith.select %69, %57, %54 : vector<2x1xi1>, vector<2x1xf32>
    %c2_i32 = arith.constant 2 : i32
    %cst_33 = arith.constant 5.000000e-01 : f32
    %71 = vector.broadcast %cst_33 : f32 to vector<2x1xf32>
    %72 = arith.mulf %56, %71 : vector<2x1xf32>
    %73 = arith.addf %70, %72 : vector<2x1xf32>
    %74 = vector.broadcast %73 : vector<2x1xf32> to vector<2x16xf32>
    %75 = arith.subf %22, %74 : vector<2x16xf32>
    %cst_34 = arith.constant 0.000000e+00 : f32
    %76 = vector.broadcast %cst_34 : f32 to vector<2x16xf32>
    %77 = arith.maximumf %75, %76 : vector<2x16xf32>
    %78 = arith.mulf %77, %77 : vector<2x16xf32>
    %cst_35 = arith.constant dense<0.000000e+00> : vector<2xf32>
    %79 = vector.multi_reduction <add>, %78, %cst_35 [1] : vector<2x16xf32> to vector<2xf32>
    %80 = vector.shape_cast %79 : vector<2xf32> to vector<2x1xf32>
    %cst_36 = arith.constant 1.000000e+00 : f32
    %81 = vector.broadcast %cst_36 : f32 to vector<2x1xf32>
    %82 = arith.subf %80, %81 : vector<2x1xf32>
    %83 = arith.mulf %82, %37 : vector<2x1xf32>
    %cst_37 = arith.constant 0.000000e+00 : f32
    %84 = vector.broadcast %cst_37 : f32 to vector<2x1xf32>
    %85 = arith.cmpf oge, %83, %84 : vector<2x1xf32>
    %86 = arith.select %85, %73, %70 : vector<2x1xi1>, vector<2x1xf32>
    %c3_i32 = arith.constant 3 : i32
    %cst_38 = arith.constant 5.000000e-01 : f32
    %87 = vector.broadcast %cst_38 : f32 to vector<2x1xf32>
    %88 = arith.mulf %72, %87 : vector<2x1xf32>
    %89 = arith.addf %86, %88 : vector<2x1xf32>
    %90 = vector.broadcast %89 : vector<2x1xf32> to vector<2x16xf32>
    %91 = arith.subf %22, %90 : vector<2x16xf32>
    %cst_39 = arith.constant 0.000000e+00 : f32
    %92 = vector.broadcast %cst_39 : f32 to vector<2x16xf32>
    %93 = arith.maximumf %91, %92 : vector<2x16xf32>
    %94 = arith.mulf %93, %93 : vector<2x16xf32>
    %cst_40 = arith.constant dense<0.000000e+00> : vector<2xf32>
    %95 = vector.multi_reduction <add>, %94, %cst_40 [1] : vector<2x16xf32> to vector<2xf32>
    %96 = vector.shape_cast %95 : vector<2xf32> to vector<2x1xf32>
    %cst_41 = arith.constant 1.000000e+00 : f32
    %97 = vector.broadcast %cst_41 : f32 to vector<2x1xf32>
    %98 = arith.subf %96, %97 : vector<2x1xf32>
    %99 = arith.mulf %98, %37 : vector<2x1xf32>
    %cst_42 = arith.constant 0.000000e+00 : f32
    %100 = vector.broadcast %cst_42 : f32 to vector<2x1xf32>
    %101 = arith.cmpf oge, %99, %100 : vector<2x1xf32>
    %102 = arith.select %101, %89, %86 : vector<2x1xi1>, vector<2x1xf32>
    %c4_i32 = arith.constant 4 : i32
    %cst_43 = arith.constant 5.000000e-01 : f32
    %103 = vector.broadcast %cst_43 : f32 to vector<2x1xf32>
    %104 = arith.mulf %88, %103 : vector<2x1xf32>
    %105 = arith.addf %102, %104 : vector<2x1xf32>
    %106 = vector.broadcast %105 : vector<2x1xf32> to vector<2x16xf32>
    %107 = arith.subf %22, %106 : vector<2x16xf32>
    %cst_44 = arith.constant 0.000000e+00 : f32
    %108 = vector.broadcast %cst_44 : f32 to vector<2x16xf32>
    %109 = arith.maximumf %107, %108 : vector<2x16xf32>
    %110 = arith.mulf %109, %109 : vector<2x16xf32>
    %cst_45 = arith.constant dense<0.000000e+00> : vector<2xf32>
    %111 = vector.multi_reduction <add>, %110, %cst_45 [1] : vector<2x16xf32> to vector<2xf32>
    %112 = vector.shape_cast %111 : vector<2xf32> to vector<2x1xf32>
    %cst_46 = arith.constant 1.000000e+00 : f32
    %113 = vector.broadcast %cst_46 : f32 to vector<2x1xf32>
    %114 = arith.subf %112, %113 : vector<2x1xf32>
    %115 = arith.mulf %114, %37 : vector<2x1xf32>
    %cst_47 = arith.constant 0.000000e+00 : f32
    %116 = vector.broadcast %cst_47 : f32 to vector<2x1xf32>
    %117 = arith.cmpf oge, %115, %116 : vector<2x1xf32>
    %118 = arith.select %117, %105, %102 : vector<2x1xi1>, vector<2x1xf32>
    %c5_i32 = arith.constant 5 : i32
    %cst_48 = arith.constant 5.000000e-01 : f32
    %119 = vector.broadcast %cst_48 : f32 to vector<2x1xf32>
    %120 = arith.mulf %104, %119 : vector<2x1xf32>
    %121 = arith.addf %118, %120 : vector<2x1xf32>
    %122 = vector.broadcast %121 : vector<2x1xf32> to vector<2x16xf32>
    %123 = arith.subf %22, %122 : vector<2x16xf32>
    %cst_49 = arith.constant 0.000000e+00 : f32
    %124 = vector.broadcast %cst_49 : f32 to vector<2x16xf32>
    %125 = arith.maximumf %123, %124 : vector<2x16xf32>
    %126 = arith.mulf %125, %125 : vector<2x16xf32>
    %cst_50 = arith.constant dense<0.000000e+00> : vector<2xf32>
    %127 = vector.multi_reduction <add>, %126, %cst_50 [1] : vector<2x16xf32> to vector<2xf32>
    %128 = vector.shape_cast %127 : vector<2xf32> to vector<2x1xf32>
    %cst_51 = arith.constant 1.000000e+00 : f32
    %129 = vector.broadcast %cst_51 : f32 to vector<2x1xf32>
    %130 = arith.subf %128, %129 : vector<2x1xf32>
    %131 = arith.mulf %130, %37 : vector<2x1xf32>
    %cst_52 = arith.constant 0.000000e+00 : f32
    %132 = vector.broadcast %cst_52 : f32 to vector<2x1xf32>
    %133 = arith.cmpf oge, %131, %132 : vector<2x1xf32>
    %134 = arith.select %133, %121, %118 : vector<2x1xi1>, vector<2x1xf32>
    %c6_i32 = arith.constant 6 : i32
    %cst_53 = arith.constant 5.000000e-01 : f32
    %135 = vector.broadcast %cst_53 : f32 to vector<2x1xf32>
    %136 = arith.mulf %120, %135 : vector<2x1xf32>
    %137 = arith.addf %134, %136 : vector<2x1xf32>
    %138 = vector.broadcast %137 : vector<2x1xf32> to vector<2x16xf32>
    %139 = arith.subf %22, %138 : vector<2x16xf32>
    %cst_54 = arith.constant 0.000000e+00 : f32
    %140 = vector.broadcast %cst_54 : f32 to vector<2x16xf32>
    %141 = arith.maximumf %139, %140 : vector<2x16xf32>
    %142 = arith.mulf %141, %141 : vector<2x16xf32>
    %cst_55 = arith.constant dense<0.000000e+00> : vector<2xf32>
    %143 = vector.multi_reduction <add>, %142, %cst_55 [1] : vector<2x16xf32> to vector<2xf32>
    %144 = vector.shape_cast %143 : vector<2xf32> to vector<2x1xf32>
    %cst_56 = arith.constant 1.000000e+00 : f32
    %145 = vector.broadcast %cst_56 : f32 to vector<2x1xf32>
    %146 = arith.subf %144, %145 : vector<2x1xf32>
    %147 = arith.mulf %146, %37 : vector<2x1xf32>
    %cst_57 = arith.constant 0.000000e+00 : f32
    %148 = vector.broadcast %cst_57 : f32 to vector<2x1xf32>
    %149 = arith.cmpf oge, %147, %148 : vector<2x1xf32>
    %150 = arith.select %149, %137, %134 : vector<2x1xi1>, vector<2x1xf32>
    %c7_i32 = arith.constant 7 : i32
    %cst_58 = arith.constant 5.000000e-01 : f32
    %151 = vector.broadcast %cst_58 : f32 to vector<2x1xf32>
    %152 = arith.mulf %136, %151 : vector<2x1xf32>
    %153 = arith.addf %150, %152 : vector<2x1xf32>
    %154 = vector.broadcast %153 : vector<2x1xf32> to vector<2x16xf32>
    %155 = arith.subf %22, %154 : vector<2x16xf32>
    %cst_59 = arith.constant 0.000000e+00 : f32
    %156 = vector.broadcast %cst_59 : f32 to vector<2x16xf32>
    %157 = arith.maximumf %155, %156 : vector<2x16xf32>
    %158 = arith.mulf %157, %157 : vector<2x16xf32>
    %cst_60 = arith.constant dense<0.000000e+00> : vector<2xf32>
    %159 = vector.multi_reduction <add>, %158, %cst_60 [1] : vector<2x16xf32> to vector<2xf32>
    %160 = vector.shape_cast %159 : vector<2xf32> to vector<2x1xf32>
    %cst_61 = arith.constant 1.000000e+00 : f32
    %161 = vector.broadcast %cst_61 : f32 to vector<2x1xf32>
    %162 = arith.subf %160, %161 : vector<2x1xf32>
    %163 = arith.mulf %162, %37 : vector<2x1xf32>
    %cst_62 = arith.constant 0.000000e+00 : f32
    %164 = vector.broadcast %cst_62 : f32 to vector<2x1xf32>
    %165 = arith.cmpf oge, %163, %164 : vector<2x1xf32>
    %166 = arith.select %165, %153, %150 : vector<2x1xi1>, vector<2x1xf32>
    %c8_i32 = arith.constant 8 : i32
    %cst_63 = arith.constant 5.000000e-01 : f32
    %167 = vector.broadcast %cst_63 : f32 to vector<2x1xf32>
    %168 = arith.mulf %152, %167 : vector<2x1xf32>
    %169 = arith.addf %166, %168 : vector<2x1xf32>
    %170 = vector.broadcast %169 : vector<2x1xf32> to vector<2x16xf32>
    %171 = arith.subf %22, %170 : vector<2x16xf32>
    %cst_64 = arith.constant 0.000000e+00 : f32
    %172 = vector.broadcast %cst_64 : f32 to vector<2x16xf32>
    %173 = arith.maximumf %171, %172 : vector<2x16xf32>
    %174 = arith.mulf %173, %173 : vector<2x16xf32>
    %cst_65 = arith.constant dense<0.000000e+00> : vector<2xf32>
    %175 = vector.multi_reduction <add>, %174, %cst_65 [1] : vector<2x16xf32> to vector<2xf32>
    %176 = vector.shape_cast %175 : vector<2xf32> to vector<2x1xf32>
    %cst_66 = arith.constant 1.000000e+00 : f32
    %177 = vector.broadcast %cst_66 : f32 to vector<2x1xf32>
    %178 = arith.subf %176, %177 : vector<2x1xf32>
    %179 = arith.mulf %178, %37 : vector<2x1xf32>
    %cst_67 = arith.constant 0.000000e+00 : f32
    %180 = vector.broadcast %cst_67 : f32 to vector<2x1xf32>
    %181 = arith.cmpf oge, %179, %180 : vector<2x1xf32>
    %182 = arith.select %181, %169, %166 : vector<2x1xi1>, vector<2x1xf32>
    %c9_i32 = arith.constant 9 : i32
    %cst_68 = arith.constant 5.000000e-01 : f32
    %183 = vector.broadcast %cst_68 : f32 to vector<2x1xf32>
    %184 = arith.mulf %168, %183 : vector<2x1xf32>
    %185 = arith.addf %182, %184 : vector<2x1xf32>
    %186 = vector.broadcast %185 : vector<2x1xf32> to vector<2x16xf32>
    %187 = arith.subf %22, %186 : vector<2x16xf32>
    %cst_69 = arith.constant 0.000000e+00 : f32
    %188 = vector.broadcast %cst_69 : f32 to vector<2x16xf32>
    %189 = arith.maximumf %187, %188 : vector<2x16xf32>
    %190 = arith.mulf %189, %189 : vector<2x16xf32>
    %cst_70 = arith.constant dense<0.000000e+00> : vector<2xf32>
    %191 = vector.multi_reduction <add>, %190, %cst_70 [1] : vector<2x16xf32> to vector<2xf32>
    %192 = vector.shape_cast %191 : vector<2xf32> to vector<2x1xf32>
    %cst_71 = arith.constant 1.000000e+00 : f32
    %193 = vector.broadcast %cst_71 : f32 to vector<2x1xf32>
    %194 = arith.subf %192, %193 : vector<2x1xf32>
    %195 = arith.mulf %194, %37 : vector<2x1xf32>
    %cst_72 = arith.constant 0.000000e+00 : f32
    %196 = vector.broadcast %cst_72 : f32 to vector<2x1xf32>
    %197 = arith.cmpf oge, %195, %196 : vector<2x1xf32>
    %198 = arith.select %197, %185, %182 : vector<2x1xi1>, vector<2x1xf32>
    %c10_i32 = arith.constant 10 : i32
    %cst_73 = arith.constant 5.000000e-01 : f32
    %199 = vector.broadcast %cst_73 : f32 to vector<2x1xf32>
    %200 = arith.mulf %184, %199 : vector<2x1xf32>
    %201 = arith.addf %198, %200 : vector<2x1xf32>
    %202 = vector.broadcast %201 : vector<2x1xf32> to vector<2x16xf32>
    %203 = arith.subf %22, %202 : vector<2x16xf32>
    %cst_74 = arith.constant 0.000000e+00 : f32
    %204 = vector.broadcast %cst_74 : f32 to vector<2x16xf32>
    %205 = arith.maximumf %203, %204 : vector<2x16xf32>
    %206 = arith.mulf %205, %205 : vector<2x16xf32>
    %cst_75 = arith.constant dense<0.000000e+00> : vector<2xf32>
    %207 = vector.multi_reduction <add>, %206, %cst_75 [1] : vector<2x16xf32> to vector<2xf32>
    %208 = vector.shape_cast %207 : vector<2xf32> to vector<2x1xf32>
    %cst_76 = arith.constant 1.000000e+00 : f32
    %209 = vector.broadcast %cst_76 : f32 to vector<2x1xf32>
    %210 = arith.subf %208, %209 : vector<2x1xf32>
    %211 = arith.mulf %210, %37 : vector<2x1xf32>
    %cst_77 = arith.constant 0.000000e+00 : f32
    %212 = vector.broadcast %cst_77 : f32 to vector<2x1xf32>
    %213 = arith.cmpf oge, %211, %212 : vector<2x1xf32>
    %214 = arith.select %213, %201, %198 : vector<2x1xi1>, vector<2x1xf32>
    %c11_i32 = arith.constant 11 : i32
    %cst_78 = arith.constant 5.000000e-01 : f32
    %215 = vector.broadcast %cst_78 : f32 to vector<2x1xf32>
    %216 = arith.mulf %200, %215 : vector<2x1xf32>
    %217 = arith.addf %214, %216 : vector<2x1xf32>
    %218 = vector.broadcast %217 : vector<2x1xf32> to vector<2x16xf32>
    %219 = arith.subf %22, %218 : vector<2x16xf32>
    %cst_79 = arith.constant 0.000000e+00 : f32
    %220 = vector.broadcast %cst_79 : f32 to vector<2x16xf32>
    %221 = arith.maximumf %219, %220 : vector<2x16xf32>
    %222 = arith.mulf %221, %221 : vector<2x16xf32>
    %cst_80 = arith.constant dense<0.000000e+00> : vector<2xf32>
    %223 = vector.multi_reduction <add>, %222, %cst_80 [1] : vector<2x16xf32> to vector<2xf32>
    %224 = vector.shape_cast %223 : vector<2xf32> to vector<2x1xf32>
    %cst_81 = arith.constant 1.000000e+00 : f32
    %225 = vector.broadcast %cst_81 : f32 to vector<2x1xf32>
    %226 = arith.subf %224, %225 : vector<2x1xf32>
    %227 = arith.mulf %226, %37 : vector<2x1xf32>
    %cst_82 = arith.constant 0.000000e+00 : f32
    %228 = vector.broadcast %cst_82 : f32 to vector<2x1xf32>
    %229 = arith.cmpf oge, %227, %228 : vector<2x1xf32>
    %230 = arith.select %229, %217, %214 : vector<2x1xi1>, vector<2x1xf32>
    %c12_i32 = arith.constant 12 : i32
    %cst_83 = arith.constant 5.000000e-01 : f32
    %231 = vector.broadcast %cst_83 : f32 to vector<2x1xf32>
    %232 = arith.mulf %216, %231 : vector<2x1xf32>
    %233 = arith.addf %230, %232 : vector<2x1xf32>
    %234 = vector.broadcast %233 : vector<2x1xf32> to vector<2x16xf32>
    %235 = arith.subf %22, %234 : vector<2x16xf32>
    %cst_84 = arith.constant 0.000000e+00 : f32
    %236 = vector.broadcast %cst_84 : f32 to vector<2x16xf32>
    %237 = arith.maximumf %235, %236 : vector<2x16xf32>
    %238 = arith.mulf %237, %237 : vector<2x16xf32>
    %cst_85 = arith.constant dense<0.000000e+00> : vector<2xf32>
    %239 = vector.multi_reduction <add>, %238, %cst_85 [1] : vector<2x16xf32> to vector<2xf32>
    %240 = vector.shape_cast %239 : vector<2xf32> to vector<2x1xf32>
    %cst_86 = arith.constant 1.000000e+00 : f32
    %241 = vector.broadcast %cst_86 : f32 to vector<2x1xf32>
    %242 = arith.subf %240, %241 : vector<2x1xf32>
    %243 = arith.mulf %242, %37 : vector<2x1xf32>
    %cst_87 = arith.constant 0.000000e+00 : f32
    %244 = vector.broadcast %cst_87 : f32 to vector<2x1xf32>
    %245 = arith.cmpf oge, %243, %244 : vector<2x1xf32>
    %246 = arith.select %245, %233, %230 : vector<2x1xi1>, vector<2x1xf32>
    %c13_i32 = arith.constant 13 : i32
    %cst_88 = arith.constant 5.000000e-01 : f32
    %247 = vector.broadcast %cst_88 : f32 to vector<2x1xf32>
    %248 = arith.mulf %232, %247 : vector<2x1xf32>
    %249 = arith.addf %246, %248 : vector<2x1xf32>
    %250 = vector.broadcast %249 : vector<2x1xf32> to vector<2x16xf32>
    %251 = arith.subf %22, %250 : vector<2x16xf32>
    %cst_89 = arith.constant 0.000000e+00 : f32
    %252 = vector.broadcast %cst_89 : f32 to vector<2x16xf32>
    %253 = arith.maximumf %251, %252 : vector<2x16xf32>
    %254 = arith.mulf %253, %253 : vector<2x16xf32>
    %cst_90 = arith.constant dense<0.000000e+00> : vector<2xf32>
    %255 = vector.multi_reduction <add>, %254, %cst_90 [1] : vector<2x16xf32> to vector<2xf32>
    %256 = vector.shape_cast %255 : vector<2xf32> to vector<2x1xf32>
    %cst_91 = arith.constant 1.000000e+00 : f32
    %257 = vector.broadcast %cst_91 : f32 to vector<2x1xf32>
    %258 = arith.subf %256, %257 : vector<2x1xf32>
    %259 = arith.mulf %258, %37 : vector<2x1xf32>
    %cst_92 = arith.constant 0.000000e+00 : f32
    %260 = vector.broadcast %cst_92 : f32 to vector<2x1xf32>
    %261 = arith.cmpf oge, %259, %260 : vector<2x1xf32>
    %262 = arith.select %261, %249, %246 : vector<2x1xi1>, vector<2x1xf32>
    %c14_i32 = arith.constant 14 : i32
    %cst_93 = arith.constant 5.000000e-01 : f32
    %263 = vector.broadcast %cst_93 : f32 to vector<2x1xf32>
    %264 = arith.mulf %248, %263 : vector<2x1xf32>
    %265 = arith.addf %262, %264 : vector<2x1xf32>
    %266 = vector.broadcast %265 : vector<2x1xf32> to vector<2x16xf32>
    %267 = arith.subf %22, %266 : vector<2x16xf32>
    %cst_94 = arith.constant 0.000000e+00 : f32
    %268 = vector.broadcast %cst_94 : f32 to vector<2x16xf32>
    %269 = arith.maximumf %267, %268 : vector<2x16xf32>
    %270 = arith.mulf %269, %269 : vector<2x16xf32>
    %cst_95 = arith.constant dense<0.000000e+00> : vector<2xf32>
    %271 = vector.multi_reduction <add>, %270, %cst_95 [1] : vector<2x16xf32> to vector<2xf32>
    %272 = vector.shape_cast %271 : vector<2xf32> to vector<2x1xf32>
    %cst_96 = arith.constant 1.000000e+00 : f32
    %273 = vector.broadcast %cst_96 : f32 to vector<2x1xf32>
    %274 = arith.subf %272, %273 : vector<2x1xf32>
    %275 = arith.mulf %274, %37 : vector<2x1xf32>
    %cst_97 = arith.constant 0.000000e+00 : f32
    %276 = vector.broadcast %cst_97 : f32 to vector<2x1xf32>
    %277 = arith.cmpf oge, %275, %276 : vector<2x1xf32>
    %278 = arith.select %277, %265, %262 : vector<2x1xi1>, vector<2x1xf32>
    %c15_i32 = arith.constant 15 : i32
    %cst_98 = arith.constant 5.000000e-01 : f32
    %279 = vector.broadcast %cst_98 : f32 to vector<2x1xf32>
    %280 = arith.mulf %264, %279 : vector<2x1xf32>
    %281 = arith.addf %278, %280 : vector<2x1xf32>
    %282 = vector.broadcast %281 : vector<2x1xf32> to vector<2x16xf32>
    %283 = arith.subf %22, %282 : vector<2x16xf32>
    %cst_99 = arith.constant 0.000000e+00 : f32
    %284 = vector.broadcast %cst_99 : f32 to vector<2x16xf32>
    %285 = arith.maximumf %283, %284 : vector<2x16xf32>
    %286 = arith.mulf %285, %285 : vector<2x16xf32>
    %cst_100 = arith.constant dense<0.000000e+00> : vector<2xf32>
    %287 = vector.multi_reduction <add>, %286, %cst_100 [1] : vector<2x16xf32> to vector<2xf32>
    %288 = vector.shape_cast %287 : vector<2xf32> to vector<2x1xf32>
    %cst_101 = arith.constant 1.000000e+00 : f32
    %289 = vector.broadcast %cst_101 : f32 to vector<2x1xf32>
    %290 = arith.subf %288, %289 : vector<2x1xf32>
    %291 = arith.mulf %290, %37 : vector<2x1xf32>
    %cst_102 = arith.constant 0.000000e+00 : f32
    %292 = vector.broadcast %cst_102 : f32 to vector<2x1xf32>
    %293 = arith.cmpf oge, %291, %292 : vector<2x1xf32>
    %294 = arith.select %293, %281, %278 : vector<2x1xi1>, vector<2x1xf32>
    %c16_i32 = arith.constant 16 : i32
    %cst_103 = arith.constant 5.000000e-01 : f32
    %295 = vector.broadcast %cst_103 : f32 to vector<2x1xf32>
    %296 = arith.mulf %280, %295 : vector<2x1xf32>
    %297 = arith.addf %294, %296 : vector<2x1xf32>
    %298 = vector.broadcast %297 : vector<2x1xf32> to vector<2x16xf32>
    %299 = arith.subf %22, %298 : vector<2x16xf32>
    %cst_104 = arith.constant 0.000000e+00 : f32
    %300 = vector.broadcast %cst_104 : f32 to vector<2x16xf32>
    %301 = arith.maximumf %299, %300 : vector<2x16xf32>
    %302 = arith.mulf %301, %301 : vector<2x16xf32>
    %cst_105 = arith.constant dense<0.000000e+00> : vector<2xf32>
    %303 = vector.multi_reduction <add>, %302, %cst_105 [1] : vector<2x16xf32> to vector<2xf32>
    %304 = vector.shape_cast %303 : vector<2xf32> to vector<2x1xf32>
    %cst_106 = arith.constant 1.000000e+00 : f32
    %305 = vector.broadcast %cst_106 : f32 to vector<2x1xf32>
    %306 = arith.subf %304, %305 : vector<2x1xf32>
    %307 = arith.mulf %306, %37 : vector<2x1xf32>
    %cst_107 = arith.constant 0.000000e+00 : f32
    %308 = vector.broadcast %cst_107 : f32 to vector<2x1xf32>
    %309 = arith.cmpf oge, %307, %308 : vector<2x1xf32>
    %310 = arith.select %309, %297, %294 : vector<2x1xi1>, vector<2x1xf32>
    %c17_i32 = arith.constant 17 : i32
    %cst_108 = arith.constant 5.000000e-01 : f32
    %311 = vector.broadcast %cst_108 : f32 to vector<2x1xf32>
    %312 = arith.mulf %296, %311 : vector<2x1xf32>
    %313 = arith.addf %310, %312 : vector<2x1xf32>
    %314 = vector.broadcast %313 : vector<2x1xf32> to vector<2x16xf32>
    %315 = arith.subf %22, %314 : vector<2x16xf32>
    %cst_109 = arith.constant 0.000000e+00 : f32
    %316 = vector.broadcast %cst_109 : f32 to vector<2x16xf32>
    %317 = arith.maximumf %315, %316 : vector<2x16xf32>
    %318 = arith.mulf %317, %317 : vector<2x16xf32>
    %cst_110 = arith.constant dense<0.000000e+00> : vector<2xf32>
    %319 = vector.multi_reduction <add>, %318, %cst_110 [1] : vector<2x16xf32> to vector<2xf32>
    %320 = vector.shape_cast %319 : vector<2xf32> to vector<2x1xf32>
    %cst_111 = arith.constant 1.000000e+00 : f32
    %321 = vector.broadcast %cst_111 : f32 to vector<2x1xf32>
    %322 = arith.subf %320, %321 : vector<2x1xf32>
    %323 = arith.mulf %322, %37 : vector<2x1xf32>
    %cst_112 = arith.constant 0.000000e+00 : f32
    %324 = vector.broadcast %cst_112 : f32 to vector<2x1xf32>
    %325 = arith.cmpf oge, %323, %324 : vector<2x1xf32>
    %326 = arith.select %325, %313, %310 : vector<2x1xi1>, vector<2x1xf32>
    %c18_i32 = arith.constant 18 : i32
    %cst_113 = arith.constant 5.000000e-01 : f32
    %327 = vector.broadcast %cst_113 : f32 to vector<2x1xf32>
    %328 = arith.mulf %312, %327 : vector<2x1xf32>
    %329 = arith.addf %326, %328 : vector<2x1xf32>
    %330 = vector.broadcast %329 : vector<2x1xf32> to vector<2x16xf32>
    %331 = arith.subf %22, %330 : vector<2x16xf32>
    %cst_114 = arith.constant 0.000000e+00 : f32
    %332 = vector.broadcast %cst_114 : f32 to vector<2x16xf32>
    %333 = arith.maximumf %331, %332 : vector<2x16xf32>
    %334 = arith.mulf %333, %333 : vector<2x16xf32>
    %cst_115 = arith.constant dense<0.000000e+00> : vector<2xf32>
    %335 = vector.multi_reduction <add>, %334, %cst_115 [1] : vector<2x16xf32> to vector<2xf32>
    %336 = vector.shape_cast %335 : vector<2xf32> to vector<2x1xf32>
    %cst_116 = arith.constant 1.000000e+00 : f32
    %337 = vector.broadcast %cst_116 : f32 to vector<2x1xf32>
    %338 = arith.subf %336, %337 : vector<2x1xf32>
    %339 = arith.mulf %338, %37 : vector<2x1xf32>
    %cst_117 = arith.constant 0.000000e+00 : f32
    %340 = vector.broadcast %cst_117 : f32 to vector<2x1xf32>
    %341 = arith.cmpf oge, %339, %340 : vector<2x1xf32>
    %342 = arith.select %341, %329, %326 : vector<2x1xi1>, vector<2x1xf32>
    %c19_i32 = arith.constant 19 : i32
    %cst_118 = arith.constant 5.000000e-01 : f32
    %343 = vector.broadcast %cst_118 : f32 to vector<2x1xf32>
    %344 = arith.mulf %328, %343 : vector<2x1xf32>
    %345 = arith.addf %342, %344 : vector<2x1xf32>
    %346 = vector.broadcast %345 : vector<2x1xf32> to vector<2x16xf32>
    %347 = arith.subf %22, %346 : vector<2x16xf32>
    %cst_119 = arith.constant 0.000000e+00 : f32
    %348 = vector.broadcast %cst_119 : f32 to vector<2x16xf32>
    %349 = arith.maximumf %347, %348 : vector<2x16xf32>
    %350 = arith.mulf %349, %349 : vector<2x16xf32>
    %cst_120 = arith.constant dense<0.000000e+00> : vector<2xf32>
    %351 = vector.multi_reduction <add>, %350, %cst_120 [1] : vector<2x16xf32> to vector<2xf32>
    %352 = vector.shape_cast %351 : vector<2xf32> to vector<2x1xf32>
    %cst_121 = arith.constant 1.000000e+00 : f32
    %353 = vector.broadcast %cst_121 : f32 to vector<2x1xf32>
    %354 = arith.subf %352, %353 : vector<2x1xf32>
    %355 = arith.mulf %354, %37 : vector<2x1xf32>
    %cst_122 = arith.constant 0.000000e+00 : f32
    %356 = vector.broadcast %cst_122 : f32 to vector<2x1xf32>
    %357 = arith.cmpf oge, %355, %356 : vector<2x1xf32>
    %358 = arith.select %357, %345, %342 : vector<2x1xi1>, vector<2x1xf32>
    %c20_i32 = arith.constant 20 : i32
    %cst_123 = arith.constant 5.000000e-01 : f32
    %359 = vector.broadcast %cst_123 : f32 to vector<2x1xf32>
    %360 = arith.mulf %344, %359 : vector<2x1xf32>
    %361 = arith.addf %358, %360 : vector<2x1xf32>
    %362 = vector.broadcast %361 : vector<2x1xf32> to vector<2x16xf32>
    %363 = arith.subf %22, %362 : vector<2x16xf32>
    %cst_124 = arith.constant 0.000000e+00 : f32
    %364 = vector.broadcast %cst_124 : f32 to vector<2x16xf32>
    %365 = arith.maximumf %363, %364 : vector<2x16xf32>
    %366 = arith.mulf %365, %365 : vector<2x16xf32>
    %cst_125 = arith.constant dense<0.000000e+00> : vector<2xf32>
    %367 = vector.multi_reduction <add>, %366, %cst_125 [1] : vector<2x16xf32> to vector<2xf32>
    %368 = vector.shape_cast %367 : vector<2xf32> to vector<2x1xf32>
    %cst_126 = arith.constant 1.000000e+00 : f32
    %369 = vector.broadcast %cst_126 : f32 to vector<2x1xf32>
    %370 = arith.subf %368, %369 : vector<2x1xf32>
    %371 = arith.mulf %370, %37 : vector<2x1xf32>
    %cst_127 = arith.constant 0.000000e+00 : f32
    %372 = vector.broadcast %cst_127 : f32 to vector<2x1xf32>
    %373 = arith.cmpf oge, %371, %372 : vector<2x1xf32>
    %374 = arith.select %373, %361, %358 : vector<2x1xi1>, vector<2x1xf32>
    %c21_i32 = arith.constant 21 : i32
    %cst_128 = arith.constant 5.000000e-01 : f32
    %375 = vector.broadcast %cst_128 : f32 to vector<2x1xf32>
    %376 = arith.mulf %360, %375 : vector<2x1xf32>
    %377 = arith.addf %374, %376 : vector<2x1xf32>
    %378 = vector.broadcast %377 : vector<2x1xf32> to vector<2x16xf32>
    %379 = arith.subf %22, %378 : vector<2x16xf32>
    %cst_129 = arith.constant 0.000000e+00 : f32
    %380 = vector.broadcast %cst_129 : f32 to vector<2x16xf32>
    %381 = arith.maximumf %379, %380 : vector<2x16xf32>
    %382 = arith.mulf %381, %381 : vector<2x16xf32>
    %cst_130 = arith.constant dense<0.000000e+00> : vector<2xf32>
    %383 = vector.multi_reduction <add>, %382, %cst_130 [1] : vector<2x16xf32> to vector<2xf32>
    %384 = vector.shape_cast %383 : vector<2xf32> to vector<2x1xf32>
    %cst_131 = arith.constant 1.000000e+00 : f32
    %385 = vector.broadcast %cst_131 : f32 to vector<2x1xf32>
    %386 = arith.subf %384, %385 : vector<2x1xf32>
    %387 = arith.mulf %386, %37 : vector<2x1xf32>
    %cst_132 = arith.constant 0.000000e+00 : f32
    %388 = vector.broadcast %cst_132 : f32 to vector<2x1xf32>
    %389 = arith.cmpf oge, %387, %388 : vector<2x1xf32>
    %390 = arith.select %389, %377, %374 : vector<2x1xi1>, vector<2x1xf32>
    %c22_i32 = arith.constant 22 : i32
    %cst_133 = arith.constant 5.000000e-01 : f32
    %391 = vector.broadcast %cst_133 : f32 to vector<2x1xf32>
    %392 = arith.mulf %376, %391 : vector<2x1xf32>
    %393 = arith.addf %390, %392 : vector<2x1xf32>
    %394 = vector.broadcast %393 : vector<2x1xf32> to vector<2x16xf32>
    %395 = arith.subf %22, %394 : vector<2x16xf32>
    %cst_134 = arith.constant 0.000000e+00 : f32
    %396 = vector.broadcast %cst_134 : f32 to vector<2x16xf32>
    %397 = arith.maximumf %395, %396 : vector<2x16xf32>
    %398 = arith.mulf %397, %397 : vector<2x16xf32>
    %cst_135 = arith.constant dense<0.000000e+00> : vector<2xf32>
    %399 = vector.multi_reduction <add>, %398, %cst_135 [1] : vector<2x16xf32> to vector<2xf32>
    %400 = vector.shape_cast %399 : vector<2xf32> to vector<2x1xf32>
    %cst_136 = arith.constant 1.000000e+00 : f32
    %401 = vector.broadcast %cst_136 : f32 to vector<2x1xf32>
    %402 = arith.subf %400, %401 : vector<2x1xf32>
    %403 = arith.mulf %402, %37 : vector<2x1xf32>
    %cst_137 = arith.constant 0.000000e+00 : f32
    %404 = vector.broadcast %cst_137 : f32 to vector<2x1xf32>
    %405 = arith.cmpf oge, %403, %404 : vector<2x1xf32>
    %406 = arith.select %405, %393, %390 : vector<2x1xi1>, vector<2x1xf32>
    %c23_i32 = arith.constant 23 : i32
    %cst_138 = arith.constant 5.000000e-01 : f32
    %407 = vector.broadcast %cst_138 : f32 to vector<2x1xf32>
    %408 = arith.mulf %392, %407 : vector<2x1xf32>
    %409 = arith.addf %406, %408 : vector<2x1xf32>
    %410 = vector.broadcast %409 : vector<2x1xf32> to vector<2x16xf32>
    %411 = arith.subf %22, %410 : vector<2x16xf32>
    %cst_139 = arith.constant 0.000000e+00 : f32
    %412 = vector.broadcast %cst_139 : f32 to vector<2x16xf32>
    %413 = arith.maximumf %411, %412 : vector<2x16xf32>
    %414 = arith.mulf %413, %413 : vector<2x16xf32>
    %cst_140 = arith.constant dense<0.000000e+00> : vector<2xf32>
    %415 = vector.multi_reduction <add>, %414, %cst_140 [1] : vector<2x16xf32> to vector<2xf32>
    %416 = vector.shape_cast %415 : vector<2xf32> to vector<2x1xf32>
    %cst_141 = arith.constant 1.000000e+00 : f32
    %417 = vector.broadcast %cst_141 : f32 to vector<2x1xf32>
    %418 = arith.subf %416, %417 : vector<2x1xf32>
    %419 = arith.mulf %418, %37 : vector<2x1xf32>
    %cst_142 = arith.constant 0.000000e+00 : f32
    %420 = vector.broadcast %cst_142 : f32 to vector<2x1xf32>
    %421 = arith.cmpf oge, %419, %420 : vector<2x1xf32>
    %422 = arith.select %421, %409, %406 : vector<2x1xi1>, vector<2x1xf32>
    %c24_i32 = arith.constant 24 : i32
    %cst_143 = arith.constant 5.000000e-01 : f32
    %423 = vector.broadcast %cst_143 : f32 to vector<2x1xf32>
    %424 = arith.mulf %408, %423 : vector<2x1xf32>
    %425 = arith.addf %422, %424 : vector<2x1xf32>
    %426 = vector.broadcast %425 : vector<2x1xf32> to vector<2x16xf32>
    %427 = arith.subf %22, %426 : vector<2x16xf32>
    %cst_144 = arith.constant 0.000000e+00 : f32
    %428 = vector.broadcast %cst_144 : f32 to vector<2x16xf32>
    %429 = arith.maximumf %427, %428 : vector<2x16xf32>
    %430 = arith.mulf %429, %429 : vector<2x16xf32>
    %cst_145 = arith.constant dense<0.000000e+00> : vector<2xf32>
    %431 = vector.multi_reduction <add>, %430, %cst_145 [1] : vector<2x16xf32> to vector<2xf32>
    %432 = vector.shape_cast %431 : vector<2xf32> to vector<2x1xf32>
    %cst_146 = arith.constant 1.000000e+00 : f32
    %433 = vector.broadcast %cst_146 : f32 to vector<2x1xf32>
    %434 = arith.subf %432, %433 : vector<2x1xf32>
    %435 = arith.mulf %434, %37 : vector<2x1xf32>
    %cst_147 = arith.constant 0.000000e+00 : f32
    %436 = vector.broadcast %cst_147 : f32 to vector<2x1xf32>
    %437 = arith.cmpf oge, %435, %436 : vector<2x1xf32>
    %438 = arith.select %437, %425, %422 : vector<2x1xi1>, vector<2x1xf32>
    %c25_i32 = arith.constant 25 : i32
    %cst_148 = arith.constant 5.000000e-01 : f32
    %439 = vector.broadcast %cst_148 : f32 to vector<2x1xf32>
    %440 = arith.mulf %424, %439 : vector<2x1xf32>
    %441 = arith.addf %438, %440 : vector<2x1xf32>
    %442 = vector.broadcast %441 : vector<2x1xf32> to vector<2x16xf32>
    %443 = arith.subf %22, %442 : vector<2x16xf32>
    %cst_149 = arith.constant 0.000000e+00 : f32
    %444 = vector.broadcast %cst_149 : f32 to vector<2x16xf32>
    %445 = arith.maximumf %443, %444 : vector<2x16xf32>
    %446 = arith.mulf %445, %445 : vector<2x16xf32>
    %cst_150 = arith.constant dense<0.000000e+00> : vector<2xf32>
    %447 = vector.multi_reduction <add>, %446, %cst_150 [1] : vector<2x16xf32> to vector<2xf32>
    %448 = vector.shape_cast %447 : vector<2xf32> to vector<2x1xf32>
    %cst_151 = arith.constant 1.000000e+00 : f32
    %449 = vector.broadcast %cst_151 : f32 to vector<2x1xf32>
    %450 = arith.subf %448, %449 : vector<2x1xf32>
    %451 = arith.mulf %450, %37 : vector<2x1xf32>
    %cst_152 = arith.constant 0.000000e+00 : f32
    %452 = vector.broadcast %cst_152 : f32 to vector<2x1xf32>
    %453 = arith.cmpf oge, %451, %452 : vector<2x1xf32>
    %454 = arith.select %453, %441, %438 : vector<2x1xi1>, vector<2x1xf32>
    %c26_i32 = arith.constant 26 : i32
    %cst_153 = arith.constant 5.000000e-01 : f32
    %455 = vector.broadcast %cst_153 : f32 to vector<2x1xf32>
    %456 = arith.mulf %440, %455 : vector<2x1xf32>
    %457 = arith.addf %454, %456 : vector<2x1xf32>
    %458 = vector.broadcast %457 : vector<2x1xf32> to vector<2x16xf32>
    %459 = arith.subf %22, %458 : vector<2x16xf32>
    %cst_154 = arith.constant 0.000000e+00 : f32
    %460 = vector.broadcast %cst_154 : f32 to vector<2x16xf32>
    %461 = arith.maximumf %459, %460 : vector<2x16xf32>
    %462 = arith.mulf %461, %461 : vector<2x16xf32>
    %cst_155 = arith.constant dense<0.000000e+00> : vector<2xf32>
    %463 = vector.multi_reduction <add>, %462, %cst_155 [1] : vector<2x16xf32> to vector<2xf32>
    %464 = vector.shape_cast %463 : vector<2xf32> to vector<2x1xf32>
    %cst_156 = arith.constant 1.000000e+00 : f32
    %465 = vector.broadcast %cst_156 : f32 to vector<2x1xf32>
    %466 = arith.subf %464, %465 : vector<2x1xf32>
    %467 = arith.mulf %466, %37 : vector<2x1xf32>
    %cst_157 = arith.constant 0.000000e+00 : f32
    %468 = vector.broadcast %cst_157 : f32 to vector<2x1xf32>
    %469 = arith.cmpf oge, %467, %468 : vector<2x1xf32>
    %470 = arith.select %469, %457, %454 : vector<2x1xi1>, vector<2x1xf32>
    %c27_i32 = arith.constant 27 : i32
    %cst_158 = arith.constant 5.000000e-01 : f32
    %471 = vector.broadcast %cst_158 : f32 to vector<2x1xf32>
    %472 = arith.mulf %456, %471 : vector<2x1xf32>
    %473 = arith.addf %470, %472 : vector<2x1xf32>
    %474 = vector.broadcast %473 : vector<2x1xf32> to vector<2x16xf32>
    %475 = arith.subf %22, %474 : vector<2x16xf32>
    %cst_159 = arith.constant 0.000000e+00 : f32
    %476 = vector.broadcast %cst_159 : f32 to vector<2x16xf32>
    %477 = arith.maximumf %475, %476 : vector<2x16xf32>
    %478 = arith.mulf %477, %477 : vector<2x16xf32>
    %cst_160 = arith.constant dense<0.000000e+00> : vector<2xf32>
    %479 = vector.multi_reduction <add>, %478, %cst_160 [1] : vector<2x16xf32> to vector<2xf32>
    %480 = vector.shape_cast %479 : vector<2xf32> to vector<2x1xf32>
    %cst_161 = arith.constant 1.000000e+00 : f32
    %481 = vector.broadcast %cst_161 : f32 to vector<2x1xf32>
    %482 = arith.subf %480, %481 : vector<2x1xf32>
    %483 = arith.mulf %482, %37 : vector<2x1xf32>
    %cst_162 = arith.constant 0.000000e+00 : f32
    %484 = vector.broadcast %cst_162 : f32 to vector<2x1xf32>
    %485 = arith.cmpf oge, %483, %484 : vector<2x1xf32>
    %486 = arith.select %485, %473, %470 : vector<2x1xi1>, vector<2x1xf32>
    %c28_i32 = arith.constant 28 : i32
    %cst_163 = arith.constant 5.000000e-01 : f32
    %487 = vector.broadcast %cst_163 : f32 to vector<2x1xf32>
    %488 = arith.mulf %472, %487 : vector<2x1xf32>
    %489 = arith.addf %486, %488 : vector<2x1xf32>
    %490 = vector.broadcast %489 : vector<2x1xf32> to vector<2x16xf32>
    %491 = arith.subf %22, %490 : vector<2x16xf32>
    %cst_164 = arith.constant 0.000000e+00 : f32
    %492 = vector.broadcast %cst_164 : f32 to vector<2x16xf32>
    %493 = arith.maximumf %491, %492 : vector<2x16xf32>
    %494 = arith.mulf %493, %493 : vector<2x16xf32>
    %cst_165 = arith.constant dense<0.000000e+00> : vector<2xf32>
    %495 = vector.multi_reduction <add>, %494, %cst_165 [1] : vector<2x16xf32> to vector<2xf32>
    %496 = vector.shape_cast %495 : vector<2xf32> to vector<2x1xf32>
    %cst_166 = arith.constant 1.000000e+00 : f32
    %497 = vector.broadcast %cst_166 : f32 to vector<2x1xf32>
    %498 = arith.subf %496, %497 : vector<2x1xf32>
    %499 = arith.mulf %498, %37 : vector<2x1xf32>
    %cst_167 = arith.constant 0.000000e+00 : f32
    %500 = vector.broadcast %cst_167 : f32 to vector<2x1xf32>
    %501 = arith.cmpf oge, %499, %500 : vector<2x1xf32>
    %502 = arith.select %501, %489, %486 : vector<2x1xi1>, vector<2x1xf32>
    %c29_i32 = arith.constant 29 : i32
    %cst_168 = arith.constant 5.000000e-01 : f32
    %503 = vector.broadcast %cst_168 : f32 to vector<2x1xf32>
    %504 = arith.mulf %488, %503 : vector<2x1xf32>
    %505 = arith.addf %502, %504 : vector<2x1xf32>
    %506 = vector.broadcast %505 : vector<2x1xf32> to vector<2x16xf32>
    %507 = arith.subf %22, %506 : vector<2x16xf32>
    %cst_169 = arith.constant 0.000000e+00 : f32
    %508 = vector.broadcast %cst_169 : f32 to vector<2x16xf32>
    %509 = arith.maximumf %507, %508 : vector<2x16xf32>
    %510 = arith.mulf %509, %509 : vector<2x16xf32>
    %cst_170 = arith.constant dense<0.000000e+00> : vector<2xf32>
    %511 = vector.multi_reduction <add>, %510, %cst_170 [1] : vector<2x16xf32> to vector<2xf32>
    %512 = vector.shape_cast %511 : vector<2xf32> to vector<2x1xf32>
    %cst_171 = arith.constant 1.000000e+00 : f32
    %513 = vector.broadcast %cst_171 : f32 to vector<2x1xf32>
    %514 = arith.subf %512, %513 : vector<2x1xf32>
    %515 = arith.mulf %514, %37 : vector<2x1xf32>
    %cst_172 = arith.constant 0.000000e+00 : f32
    %516 = vector.broadcast %cst_172 : f32 to vector<2x1xf32>
    %517 = arith.cmpf oge, %515, %516 : vector<2x1xf32>
    %518 = arith.select %517, %505, %502 : vector<2x1xi1>, vector<2x1xf32>
    %519 = vector.broadcast %505 : vector<2x1xf32> to vector<2x16xf32>
    %520 = arith.subf %22, %519 : vector<2x16xf32>
    %cst_173 = arith.constant 0.000000e+00 : f32
    %521 = vector.broadcast %cst_173 : f32 to vector<2x16xf32>
    %522 = arith.maximumf %520, %521 : vector<2x16xf32>
    %523 = arith.mulf %522, %522 : vector<2x16xf32>
    %cst_174 = arith.constant dense<0.000000e+00> : vector<2xf32>
    %524 = vector.multi_reduction <add>, %523, %cst_174 [1] : vector<2x16xf32> to vector<2xf32>
    %525 = vector.shape_cast %524 : vector<2xf32> to vector<2x1xf32>
    %526 = vector.broadcast %525 : vector<2x1xf32> to vector<2x16xf32>
    %527 = arith.divf %523, %526 : vector<2x16xf32>
    %528 = vector.shape_cast %527 : vector<2x16xf32> to vector<2x1x16xf32>
    %529 = arith.truncf %528 : vector<2x1x16xf32> to vector<2x1x16xbf16>
    %c0_175 = arith.constant 0 : index
    %c0_176 = arith.constant 0 : index
    %c0_177 = arith.constant 0 : index
    %530 = vector.load %arg2[%c0_175, %c0_176, %c0_177] : memref<2x16x32xbf16, #tpu.memory_space<vmem>>, vector<2x16x32xbf16>
    "tpu.trace_start"() <{level = 10 : i32, message = "bqk,bkd->bqd"}> : () -> ()
    %cst_178 = arith.constant dense<0.000000e+00> : vector<2x1x32xf32>
    %531 = tpu.matmul %529, %530, %cst_178 {dimension_numbers = #tpu.dot_dimension_numbers<[2], [1], [1], [2], [0, 0, 0, 1, 1, 2], [0], [0]>} : vector<2x1x16xbf16>, vector<2x16x32xbf16>, vector<2x1x32xf32> -> vector<2x1x32xf32>
    "tpu.trace_stop"() : () -> ()
    %c0_179 = arith.constant 0 : index
    %c0_180 = arith.constant 0 : index
    %c0_181 = arith.constant 0 : index
    %532 = vector.load %arg7[%c0_179, %c0_180, %c0_181] : memref<2x1x32xf32, #tpu.memory_space<vmem>>, vector<2x1x32xf32>
    tpu.vector_store %arg7[%c0_179, %c0_180, %c0_181], %531 {strides = array<i32>} : memref<2x1x32xf32, #tpu.memory_space<vmem>>, vector<2x1x32xf32>,
    return
  }
  func.func @transform_0(%arg0: i32) -> (i32, i32, i32) {
    %c0_i32 = arith.constant 0 : i32
    %c0_i32_0 = arith.constant 0 : i32
    %c0_i32_1 = arith.constant 0 : i32
    return %arg0, %c0_i32, %c0_i32_0 : i32, i32, i32
  }
  func.func @transform_1(%arg0: i32) -> (i32, i32, i32) {
    %c0_i32 = arith.constant 0 : i32
    %c0_i32_0 = arith.constant 0 : i32
    %c0_i32_1 = arith.constant 0 : i32
    return %arg0, %c0_i32, %c0_i32_0 : i32, i32, i32
  }
  func.func @transform_2(%arg0: i32) -> (i32, i32, i32) {
    %c0_i32 = arith.constant 0 : i32
    %c0_i32_0 = arith.constant 0 : i32
    %c0_i32_1 = arith.constant 0 : i32
    return %arg0, %c0_i32, %c0_i32_0 : i32, i32, i32
  }
  func.func @transform_3(%arg0: i32) -> (i32, i32, i32) {
    %c0_i32 = arith.constant 0 : i32
    %c0_i32_0 = arith.constant 0 : i32
    %c0_i32_1 = arith.constant 0 : i32
    return %arg0, %c0_i32, %c0_i32_0 : i32, i32, i32
  }
  func.func @transform_4(%arg0: i32) -> (i32, i32) {
    %c0_i32 = arith.constant 0 : i32
    %c0_i32_0 = arith.constant 0 : i32
    %c0_i32_1 = arith.constant 0 : i32
    return %c0_i32, %c0_i32_0 : i32, i32
  }
  func.func @transform_5(%arg0: i32) -> (i32, i32) {
    %c0_i32 = arith.constant 0 : i32
    %c0_i32_0 = arith.constant 0 : i32
    %c0_i32_1 = arith.constant 0 : i32
    return %c0_i32, %c0_i32_0 : i32, i32
  }
  func.func @transform_6(%arg0: i32) -> (i32, i32, i32) {
    %c0_i32 = arith.constant 0 : i32
    %c0_i32_0 = arith.constant 0 : i32
    %c0_i32_1 = arith.constant 0 : i32
    return %arg0, %c0_i32, %c0_i32_0 : i32, i32, i32
  }
}

</mosaic_0001>

<bundles_post_ra>
// kernel: tpu_custom_call.1
= control target key start
LH: loop header
LB: loop body
LE: loop exit
PB: predicated region body
PF: predicated region fallthrough
CT: control target
= control target key end

     0   :  { %11 = vsyncpa [#allocation3], 0  ;;  %s2735_s0 = inlined_call_operand.hbm [shape: bf16[2,16,32], index: 0, kind: input, shape index: {}]   ;;  %s2736_s1 = inlined_call_operand.hbm [shape: bf16[2,16,32], index: 1, kind: input, shape index: {}]   ;;  %s2737_s2 = inlined_call_operand.vmem [shape: f32[2,1,32], index: 2, kind: input, shape index: {}]   ;;  %s2738_s3 = inlined_call_operand.vmem [shape: f32[2,1,16], index: 3, kind: input, shape index: {}]   ;;  %s2739_s4 = inlined_call_operand.hbm [shape: bf16[32,32], index: 4, kind: input, shape index: {}]   ;;  %s2740_s5 = inlined_call_operand.vmem [shape: f32[1,32], index: 5, kind: input, shape index: {}]   ;;  %s2741_s6 = inlined_call_operand.hbm [shape: f32[2,1,32], index: 6, kind: output, shape index: {}]  }
   0x1   :  { %12 = vsyncpa [#allocation6], 0 }
   0x2   :  { %13 = vsyncpa [#allocation4], 0  ;;  %s2301_s21 = smov [#allocation5]   ;;  %s2302_s23 = smov [#allocation2]  }
   0x3   :  { %s31_s22 = sshll.u32 %s2301_s21, 4  ;;  %s19_s24 = sshll.u32 %s2302_s23, 4  ;;  %s32_s22 = int_to_ptr.vmem [resolvable:$true] %s31_s22  ;;  %s20_s24 = int_to_ptr.vmem [resolvable:$true] %s19_s24 }
   0x4   :  { %s2223_s25 = scalar_lea.vmem %s32_s22, 256  ;;  %p2228_p1 = scmp.lt.s32.totalorder %s32_s22, %s32_s22 }
   0x5   :  { %p2224_p0 = scmp.ne.s32.totalorder %s32_s22, %s2223_s25  ;;  %p2229_p2 = scmp.lt.s32.totalorder %s2223_s25, %s2223_s25 }
   0x7   :  { %p2230_p3 = por %p2229_p2, %p2228_p1 }
   0x9   :  { %p2231_p4 = pnand %p2230_p3, %p2224_p0 }
   0xb   :  { %2234 = shalt.err (!%p2231_p4)
}
   0xc   :  { %s2303_s26 = smov 64   ;;  %s2304_s27 = smov 4  }
   0xd   :  { %37 = dma.hbm_to_vmem [thread:$0]  %s2736_s1, 256, %s32_s22, [#allocation6], %s2303_s26, %s2303_s26, %s2304_s27  }
   0xe   :  { %s2243_s30 = scalar_lea.vmem %s20_s24, 256  ;;  %p2248_p6 = scmp.lt.s32.totalorder %s20_s24, %s20_s24 }
   0xf   :  { %p2244_p5 = scmp.ne.s32.totalorder %s20_s24, %s2243_s30  ;;  %p2249_p7 = scmp.lt.s32.totalorder %s2243_s30, %s2243_s30 }
  0x11   :  { %p2250_p8 = por %p2249_p7, %p2248_p6 }
  0x13   :  { %p2251_p9 = pnand %p2250_p8, %p2244_p5 }
  0x15   :  { %2254 = shalt.err (!%p2251_p9)
}
  0x16   :  { %25 = dma.hbm_to_vmem [thread:$0]  %s2735_s0, 256, %s20_s24, [#allocation3], %s2303_s26, %s2303_s26, %s2304_s27  }
  0x17   :  { %s2305_s9 = smov [#allocation7]  }
  0x18   :  { %s47_s10 = sshll.u32 %s2305_s9, 4  ;;  %s48_s10 = int_to_ptr.vmem [resolvable:$true] %s47_s10 }
  0x19   :  { %s2263_s11 = scalar_lea.vmem %s48_s10, 256  ;;  %p2268_p11 = scmp.lt.s32.totalorder %s48_s10, %s48_s10 }
  0x1a   :  { %p2264_p10 = scmp.ne.s32.totalorder %s48_s10, %s2263_s11  ;;  %p2269_p12 = scmp.lt.s32.totalorder %s2263_s11, %s2263_s11 }
  0x1c   :  { %p2270_p13 = por %p2269_p12, %p2268_p11 }
  0x1e   :  { %p2271_p0 = pnand %p2270_p13, %p2264_p10 }
  0x20   :  { %2274 = shalt.err (!%p2271_p0)
}
  0x21   :  { %53 = dma.hbm_to_vmem [thread:$0]  %s2739_s4, 256, %s48_s10, [#allocation6], %s2303_s26, %s2303_s26, %s2304_s27  }
  0x22   :  { %2295 = dma.done.wait [#allocation3], 256  }
  0x23   :  { %2296 = vsyncadd [#allocation3], 4294967040 }
  0x24   :  { %2297 = dma.done.wait [#allocation6], 512  }
  0x25   :  { %2298 = vsyncadd [#allocation6], 4294966784  ;;  %v2205_v0 = vld [vmem:[#allocation7 + $0x8] sm:$0xff]   ;;  %v2206_v1 = vld [vmem:[#allocation7] sm:$0xff]   ;;  %vm96_vm0 = vcmask 261120   ;;  %v2306_v27 = vmov 0   ;;  %v205_v28 = vlaneseq }
  0x26   :  { %2171 = vmatprep.subr.bf16.mxu0 %v2205_v0  ;;  %v2207_v2 = vld [vmem:[#allocation2] sm:$0xff]   ;;  %v2208_v3 = vld [vmem:[#allocation2 + $0x8] sm:$0xff]   ;;  %2204 = vset.pattern.permute.xlu1 %v2306_v27  ;;  %v2307_v29 = vmov 1966171168   ;;  %vm552_vm1 = vcmask 130112   ;;  %vm615_vm4 = vcmask 123904  }
  0x27   :  { %2172 = vmatpush3.bf16.msra.mxu0 %v2205_v0  ;;  %2175 = vmatprep.mubr.msk.bf16.mxu0 %vm96_vm0, %v2207_v2  ;;  %v2125_v4 = vld [vmem:[%s2737_s2 + $0x1] ss:$0 sm:$0xff]  ;;  %v2124_v6 = vld [vmem:[%s2737_s2] ss:$0 sm:$0xff]  ;;  %v338_v30 = vunpack.c.l.s4 %v2307_v29  ;;  %v2373_v31 = vshrl.u32 %v205_v28, 7 }
  0x28   :  { %2173 = vmatprep.subr.bf16.mxu0 %v2206_v1  ;;  %v2126_v9 = vld [vmem:[%s2740_s5] ss:$0 sm:$0xff]  ;;  %2203 = vset.pattern.permute.xlu0 %v2306_v27 }
  0x29   :  { %v339_v32 = vunpack.c.0.s8 %v338_v30  ;;  %v2376_v33 = vsub.s32 0, %v2373_v31  ;;  %v2379_v34 = vsub.s32 1, %v2373_v31  ;;  %v2382_v35 = vsub.s32 2, %v2373_v31 }
  0x2a   :  { %v2385_v36 = vsub.s32 3, %v2373_v31  ;;  %v2388_v37 = vsub.s32 4, %v2373_v31  ;;  %v2391_v38 = vsub.s32 5, %v2373_v31  ;;  %v2394_v39 = vsub.s32 6, %v2373_v31 }
  0x2b   :  { %2174 = vmatpush3.bf16.msra.mxu0 %v2206_v1  ;;  %v2397_v40 = vsub.s32 7, %v2373_v31  ;;  %v2400_v42 = vsub.s32 %v339_v32, %v2373_v31 }
  0x2e   :  { %2176 = vmatmul.mubr.msk.bf16.vlgmr.msra.gmra.mxu0 %vm96_vm0, %v2208_v3 }
  0xee   :  { %v2177_v5 = vpop.f32.mrf.mxu0 }
  0xef   :  { %v168_v7 = vadd.f32 %v2177_v5, %v2125_v4 }
  0xf0   :  { %v137_v8 = vpop.f32.mrf.mxu0 }
  0xf1   :  { %v172_v10 = vmax.f32 %v168_v7, 0.0  ;;  %v166_v11 = vadd.f32 %v2124_v6, %v137_v8 }
  0xf2   :  { %v2178_v12 = vpop.f32.mrf.mxu0 }
  0xf3   :  { %v170_v13 = vmax.f32 %v166_v11, 0.0  ;;  %v169_v14 = vadd.f32 %v2178_v12, %v2125_v4  ;;  %v183_v15 = vmul.f32 %v2126_v9, %v172_v10 }
  0xf4   :  { %v140_v16 = vpop.f32.mrf.mxu0 }
  0xf5   :  { %v173_v17 = vmax.f32 %v169_v14, 0.0  ;;  %v167_v18 = vadd.f32 %v2124_v6, %v140_v16  ;;  %v191_v19 = vsel %vm96_vm0, %v183_v15, 0.0  ;;  %v181_v20 = vmul.f32 %v2126_v9, %v170_v13 }
  0xf6   :  { %192 = vadd.xlane.f32.xlu1 %v191_v19 }
  0xf7   :  { %v171_v21 = vmax.f32 %v167_v18, 0.0  ;;  %v185_v22 = vsel %vm96_vm0, %v181_v20, 0.0  ;;  %v184_v23 = vmul.f32 %v2126_v9, %v173_v17 }
  0xf8   :  { %186 = vadd.xlane.f32.xlu0 %v185_v22 }
  0xf9   :  { %v194_v24 = vsel %vm96_vm0, %v184_v23, 0.0  ;;  %v182_v25 = vmul.f32 %v2126_v9, %v171_v21 }
  0xfa   :  { %195 = vadd.xlane.f32.xlu1 %v194_v24 }
  0xfb   :  { %v188_v26 = vsel %vm96_vm0, %v182_v25, 0.0 }
  0xfc   :  { %189 = vadd.xlane.f32.xlu0 %v188_v26 }
 0x17f   :  { %v193_v41 = vpop.xlane.xlu1 %192 }
 0x180   :  { %v272_v43 = vrot.slane %v193_v41, %v2376_v33  ;;  %v276_v44 = vrot.slane %v193_v41, %v2379_v34  ;;  %v280_v45 = vrot.slane %v193_v41, %v2382_v35  ;;  %v284_v46 = vrot.slane %v193_v41, %v2385_v36 }
 0x181   :  { %v187_v47 = vpop.xlane.xlu0 %186  ;;  %v288_v48 = vrot.slane %v193_v41, %v2388_v37  ;;  %v292_v49 = vrot.slane %v193_v41, %v2391_v38  ;;  %v296_v50 = vrot.slane %v193_v41, %v2394_v39  ;;  %v300_v51 = vrot.slane %v193_v41, %v2397_v40 }
 0x182   :  { %v431_v52 = vcombine.low %v272_v43, %v276_v44  ;;  %v432_v53 = vcombine.low %v280_v45, %v284_v46  ;;  %v208_v54 = vrot.slane %v187_v47, %v2376_v33  ;;  %v212_v55 = vrot.slane %v187_v47, %v2379_v34 }
 0x183   :  { %v433_v56 = vcombine.low %v288_v48, %v292_v49  ;;  %v434_v57 = vcombine.low %v296_v50, %v300_v51  ;;  %v216_v58 = vrot.slane %v187_v47, %v2382_v35  ;;  %v220_v59 = vrot.slane %v187_v47, %v2385_v36  ;;  %v196_v17 = vpop.xlane.xlu1 %195 }
 0x184   :  { %v441_v60 = vrot.slane %v431_v52, %v2400_v42  ;;  %v448_v61 = vrot.slane %v432_v53, %v2400_v42  ;;  %v224_v62 = vrot.slane %v187_v47, %v2388_v37  ;;  %v228_v63 = vrot.slane %v187_v47, %v2391_v38 }
 0x185   :  { %v190_v0 = vpop.xlane.xlu0 %189  ;;  %v455_v1 = vrot.slane %v433_v56, %v2400_v42  ;;  %v462_v2 = vrot.slane %v434_v57, %v2400_v42  ;;  %v232_v3 = vrot.slane %v187_v47, %v2394_v39  ;;  %v236_v4 = vrot.slane %v187_v47, %v2397_v40 }
 0x186   :  { %v463_v5 = vcombine.low %v441_v60, %v448_v61  ;;  %v333_v6 = vcombine.low %v208_v54, %v212_v55  ;;  %v334_v7 = vcombine.low %v216_v58, %v220_v59  ;;  %v335_v8 = vcombine.low %v224_v62, %v228_v63 }
 0x187   :  { %v464_v9 = vcombine.low %v455_v1, %v462_v2  ;;  %v336_v10 = vcombine.low %v232_v3, %v236_v4  ;;  %v240_v11 = vrot.slane %v190_v0, %v2376_v33  ;;  %v244_v12 = vrot.slane %v190_v0, %v2379_v34 }
 0x188   :  { %v471_v13 = vrot.slane %v463_v5, %v2400_v42  ;;  %v343_v14 = vrot.slane %v333_v6, %v2400_v42  ;;  %v350_v15 = vrot.slane %v334_v7, %v2400_v42  ;;  %v357_v16 = vrot.slane %v335_v8, %v2400_v42 }
 0x189   :  { %v478_v18 = vrot.slane %v464_v9, %v2400_v42  ;;  %v364_v19 = vrot.slane %v336_v10, %v2400_v42  ;;  %v248_v20 = vrot.slane %v190_v0, %v2382_v35  ;;  %v252_v21 = vrot.slane %v190_v0, %v2385_v36 }
 0x18a   :  { %v365_v22 = vcombine.low %v343_v14, %v350_v15  ;;  %v256_v23 = vrot.slane %v190_v0, %v2388_v37  ;;  %v260_v24 = vrot.slane %v190_v0, %v2391_v38  ;;  %v264_v25 = vrot.slane %v190_v0, %v2394_v39 }
 0x18b   :  { %v479_v26 = vcombine.low %v471_v13, %v478_v18  ;;  %v366_v27 = vcombine.low %v357_v16, %v364_v19  ;;  %v268_v29 = vrot.slane %v190_v0, %v2397_v40  ;;  %v382_v30 = vcombine.low %v240_v11, %v244_v12  ;;  %v197_v18 = vld [vmem:[%s2738_s3] sm:$0x1] }
 0x18c   :  { %v373_v32 = vrot.slane %v365_v22, %v2400_v42  ;;  %v383_v41 = vcombine.low %v248_v20, %v252_v21  ;;  %v384_v43 = vcombine.low %v256_v23, %v260_v24  ;;  %v304_v44 = vrot.slane %v196_v17, %v2376_v33 }
 0x18d   :  { %536 = vperm.xlu1 %2204, %v479_v26   ;;  %v380_v45 = vrot.slane %v366_v27, %v2400_v42  ;;  %v385_v46 = vcombine.low %v264_v25, %v268_v29  ;;  %v392_v47 = vrot.slane %v382_v30, %v2400_v42  ;;  %v308_v48 = vrot.slane %v196_v17, %v2379_v34 }
 0x18e   :  { %v399_v49 = vrot.slane %v383_v41, %v2400_v42  ;;  %v406_v50 = vrot.slane %v384_v43, %v2400_v42  ;;  %v312_v51 = vrot.slane %v196_v17, %v2382_v35  ;;  %v316_v52 = vrot.slane %v196_v17, %v2385_v36 }
 0x18f   :  { %v381_v53 = vcombine.low %v373_v32, %v380_v45  ;;  %v413_v54 = vrot.slane %v385_v46, %v2400_v42  ;;  %v320_v55 = vrot.slane %v196_v17, %v2388_v37  ;;  %v324_v56 = vrot.slane %v196_v17, %v2391_v38 }
 0x190   :  { %v414_v57 = vcombine.low %v392_v47, %v399_v49  ;;  %v328_v58 = vrot.slane %v196_v17, %v2394_v39  ;;  %v332_v59 = vrot.slane %v196_v17, %v2397_v40  ;;  %v480_v60 = vcombine.low %v304_v44, %v308_v48 }
 0x191   :  { %530 = vperm.xlu0 %2203, %v381_v53   ;;  %v415_v61 = vcombine.low %v406_v50, %v413_v54  ;;  %v481_v62 = vcombine.low %v312_v51, %v316_v52  ;;  %v482_v63 = vcombine.low %v320_v55, %v324_v56  ;;  %v542_v7 = vand.u32 127, %v205_v28 }
 0x192   :  { %v422_v35 = vrot.slane %v414_v57, %v2400_v42  ;;  %v483_v36 = vcombine.low %v328_v58, %v332_v59  ;;  %v490_v0 = vrot.slane %v480_v60, %v2400_v42  ;;  %vm199_vm2 = vcmp.eq.f32.partialorder %v197_v18, 0.0 }
 0x193   :  { %v429_v1 = vrot.slane %v415_v61, %v2400_v42  ;;  %v497_v37 = vrot.slane %v481_v62, %v2400_v42  ;;  %v504_v38 = vrot.slane %v482_v63, %v2400_v42  ;;  %v547_v8 = vadd.s32 4294967288, %v542_v7 }
 0x194   :  { %v511_v39 = vrot.slane %v483_v36, %v2400_v42  ;;  %v545_v12 = vsub.s32 %v542_v7, %v2373_v31 }
 0x195   :  { %v430_v2 = vcombine.low %v422_v35, %v429_v1  ;;  %v512_v40 = vcombine.low %v490_v0, %v497_v37  ;;  %v550_v10 = vsub.s32 %v547_v8, %v2373_v31  ;;  %v198_v31 = vld [vmem:[%s2738_s3 + $0x1] sm:$0x1]  ;;  %s2310_s3 = smov [#allocation8]  }
 0x196   :  { %v513_v3 = vcombine.low %v504_v38, %v511_v39  ;;  %vm200_vm3 = vcmp.eq.f32.partialorder %v198_v31, 0.0  ;;  %s2105_s19 = sshll.u32 %s2310_s3, 4  ;;  %s2106_s19 = int_to_ptr.vmem [resolvable:$true] %s2105_s19 }
 0x197   :  { %533 = vperm.xlu1 %2204, %v430_v2   ;;  %v520_v4 = vrot.slane %v512_v40, %v2400_v42  ;;  %s2275_s20 = scalar_lea.vmem %s2106_s19, 32  ;;  %p2280_p2 = scmp.lt.s32.totalorder %s2106_s19, %s2106_s19 }
 0x198   :  { %v527_v5 = vrot.slane %v513_v3, %v2400_v42  ;;  %p2276_p1 = scmp.ne.s32.totalorder %s2106_s19, %s2275_s20  ;;  %p2281_p3 = scmp.lt.s32.totalorder %s2275_s20, %s2275_s20 }
 0x19a   :  { %v528_v6 = vcombine.low %v520_v4, %v527_v5  ;;  %p2282_p4 = por %p2281_p3, %p2280_p2 }
 0x19c   :  { %539 = vperm.xlu1 %2204, %v528_v6   ;;  %p2283_p5 = pnand %p2282_p4, %p2276_p1 }
 0x208   :  { %v537_v9 = vpop.permute.xlu1 %536 }
 0x209   :  { %v557_v28 = vrot.slane %v537_v9, %v545_v12 }
 0x20c   :  { %v531_v11 = vpop.permute.xlu0 %530 }
 0x20d   :  { %v546_v14 = vrot.slane %v531_v11, %v545_v12 }
 0x212   :  { %v534_v13 = vpop.permute.xlu1 %533 }
 0x213   :  { %v551_v15 = vrot.slane %v534_v13, %v550_v10 }
 0x215   :  { %v553_v16 = vsel %vm552_vm1, %v551_v15, %v546_v14 }
 0x216   :  { %v569_v17 = vrot.slane %v553_v16, %v2400_v42 }
 0x217   :  { %v540_v19 = vpop.permute.xlu1 %539 }
 0x218   :  { %v561_v20 = vrot.slane %v540_v19, %v550_v10  ;;  %v576_v21 = vrot.slane %v569_v17, %v2400_v42 }
 0x21a   :  { %v562_v22 = vsel %vm552_vm1, %v561_v20, %v557_v28  ;;  %v593_v24 = vsel %vm199_vm2, -inf, %v576_v21 }
 0x21b   :  { %v583_v23 = vrot.slane %v562_v22, %v2400_v42  ;;  %v2471_v27 = vmul.f32 0.5, %v593_v24 }
 0x21d   :  { %v590_v25 = vrot.slane %v583_v23, %v2400_v42 }
 0x21f   :  { %v594_v26 = vsel %vm200_vm3, -inf, %v590_v25 }
 0x220   :  { %v2473_v29 = vmul.f32 0.5, %v594_v26 }
 0x222   :  { %v599_v30 = vcombine.low %v2471_v27, %v2473_v29 }
 0x224   :  { %v606_v32 = vrot.slane %v599_v30, %v2400_v42 }
 0x226   :  { %v613_v41 = vrot.slane %v606_v32, %v2400_v42 }
 0x228   :  { %v616_v43 = vsel %vm615_vm4, %v613_v41, -inf }
 0x229   :  { %617 = vmax.xlane.f32.xlu1 %v616_v43 }
 0x2b2   :  { %v618_v44 = vpop.xlane.xlu1 %617 }
 0x2b3   :  { %v2127_v45 = vadd.f32 -1.0, %v618_v44  ;;  %v2128_v46 = vadd.f32 -0.35355338, %v618_v44 }
 0x2b5   :  { %v660_v47 = vsub.f32 %v2128_v46, %v2127_v45  ;;  %v625_v48 = vrot.slane %v2127_v45, %v2376_v33  ;;  %v629_v49 = vrot.slane %v2127_v45, %v2379_v34 }
 0x2b7   :  { %v661_v50 = vmul.f32 0.5, %v660_v47  ;;  %v632_v51 = vsub.f32 %v2471_v27, %v625_v48  ;;  %v633_v52 = vsub.f32 %v2473_v29, %v629_v49 }
 0x2b9   :  { %v662_v53 = vadd.f32 %v2127_v45, %v661_v50  ;;  %v634_v54 = vmax.f32 %v632_v51, 0.0  ;;  %v635_v55 = vmax.f32 %v633_v52, 0.0  ;;  %v705_v9 = vmul.f32 0.5, %v661_v50 }
 0x2bb   :  { %v667_v56 = vrot.slane %v662_v53, %v2376_v33  ;;  %v671_v57 = vrot.slane %v662_v53, %v2379_v34  ;;  %v636_v58 = vmul.f32 %v634_v54, %v634_v54  ;;  %v637_v59 = vmul.f32 %v635_v55, %v635_v55 }
 0x2bc   :  { %v749_v25 = vmul.f32 0.5, %v705_v9 }
 0x2bd   :  { %v640_v60 = vcombine.low %v636_v58, %v637_v59  ;;  %v674_v61 = vsub.f32 %v2471_v27, %v667_v56  ;;  %v675_v62 = vsub.f32 %v2473_v29, %v671_v57 }
 0x2be   :  { %v793_v56 = vmul.f32 0.5, %v749_v25 }
 0x2bf   :  { %v647_v63 = vrot.slane %v640_v60, %v2400_v42  ;;  %v676_v35 = vmax.f32 %v674_v61, 0.0  ;;  %v677_v36 = vmax.f32 %v675_v62, 0.0 }
 0x2c1   :  { %v654_v0 = vrot.slane %v647_v63, %v2400_v42  ;;  %v678_v1 = vmul.f32 %v676_v35, %v676_v35  ;;  %v679_v37 = vmul.f32 %v677_v36, %v677_v36 }
 0x2c3   :  { %v656_v38 = vsel %vm615_vm4, %v654_v0, 0.0  ;;  %v682_v39 = vcombine.low %v678_v1, %v679_v37 }
 0x2c4   :  { %657 = vadd.xlane.f32.xlu0 %v656_v38 }
 0x2c5   :  { %v689_v2 = vrot.slane %v682_v39, %v2400_v42 }
 0x2c7   :  { %v696_v40 = vrot.slane %v689_v2, %v2400_v42 }
 0x2c9   :  { %v698_v3 = vsel %vm615_vm4, %v696_v40, 0.0 }
 0x2ca   :  { %699 = vadd.xlane.f32.xlu1 %v698_v3 }
 0x34d   :  { %v658_v4 = vpop.xlane.xlu0 %657 }
 0x34e   :  { %v2494_v6 = vadd.f32 -1.0, %v658_v4  ;;  %v837_v4 = vmul.f32 0.5, %v793_v56 }
 0x353   :  { %v700_v5 = vpop.xlane.xlu1 %699 }
 0x354   :  { %v2130_v7 = vadd.f32 -1.0, %v700_v5 }
 0x356   :  { %v702_v8 = vmul.f32 %v2130_v7, %v2494_v6 }
 0x358   :  { %vm703_vm5 = vcmp.ge.f32.partialorder %v702_v8, 0.0 }
 0x359   :  { %v704_v10 = vsel %vm703_vm5, %v662_v53, %v2127_v45 }
 0x35a   :  { %v706_v11 = vadd.f32 %v705_v9, %v704_v10 }
 0x35c   :  { %v711_v12 = vrot.slane %v706_v11, %v2376_v33  ;;  %v715_v13 = vrot.slane %v706_v11, %v2379_v34 }
 0x35e   :  { %v718_v14 = vsub.f32 %v2471_v27, %v711_v12  ;;  %v719_v15 = vsub.f32 %v2473_v29, %v715_v13 }
 0x360   :  { %v720_v16 = vmax.f32 %v718_v14, 0.0  ;;  %v721_v17 = vmax.f32 %v719_v15, 0.0 }
 0x362   :  { %v722_v18 = vmul.f32 %v720_v16, %v720_v16  ;;  %v723_v19 = vmul.f32 %v721_v17, %v721_v17 }
 0x364   :  { %v726_v28 = vcombine.low %v722_v18, %v723_v19 }
 0x366   :  { %v733_v20 = vrot.slane %v726_v28, %v2400_v42 }
 0x368   :  { %v740_v21 = vrot.slane %v733_v20, %v2400_v42 }
 0x36a   :  { %v742_v31 = vsel %vm615_vm4, %v740_v21, 0.0 }
 0x36b   :  { %743 = vadd.xlane.f32.xlu1 %v742_v31  ;;  %v881_v31 = vmul.f32 0.5, %v837_v4 }
 0x3f4   :  { %v744_v22 = vpop.xlane.xlu1 %743 }
 0x3f5   :  { %v2131_v23 = vadd.f32 -1.0, %v744_v22 }
 0x3f7   :  { %v746_v24 = vmul.f32 %v2131_v23, %v2494_v6 }
 0x3f9   :  { %vm747_vm6 = vcmp.ge.f32.partialorder %v746_v24, 0.0 }
 0x3fa   :  { %v748_v26 = vsel %vm747_vm6, %v706_v11, %v704_v10 }
 0x3fb   :  { %v750_v30 = vadd.f32 %v749_v25, %v748_v26 }
 0x3fd   :  { %v755_v32 = vrot.slane %v750_v30, %v2376_v33  ;;  %v759_v41 = vrot.slane %v750_v30, %v2379_v34 }
 0x3ff   :  { %v762_v43 = vsub.f32 %v2471_v27, %v755_v32  ;;  %v763_v44 = vsub.f32 %v2473_v29, %v759_v41 }
 0x401   :  { %v764_v45 = vmax.f32 %v762_v43, 0.0  ;;  %v765_v46 = vmax.f32 %v763_v44, 0.0 }
 0x403   :  { %v766_v47 = vmul.f32 %v764_v45, %v764_v45  ;;  %v767_v48 = vmul.f32 %v765_v46, %v765_v46 }
 0x405   :  { %v770_v49 = vcombine.low %v766_v47, %v767_v48 }
 0x407   :  { %v777_v50 = vrot.slane %v770_v49, %v2400_v42 }
 0x409   :  { %v784_v51 = vrot.slane %v777_v50, %v2400_v42 }
 0x40b   :  { %v786_v52 = vsel %vm615_vm4, %v784_v51, 0.0 }
 0x40c   :  { %787 = vadd.xlane.f32.xlu1 %v786_v52  ;;  %v925_v52 = vmul.f32 0.5, %v881_v31 }
 0x495   :  { %v788_v53 = vpop.xlane.xlu1 %787 }
 0x496   :  { %v2132_v54 = vadd.f32 -1.0, %v788_v53 }
 0x498   :  { %v790_v55 = vmul.f32 %v2132_v54, %v2494_v6 }
 0x49a   :  { %vm791_vm7 = vcmp.ge.f32.partialorder %v790_v55, 0.0 }
 0x49b   :  { %v792_v57 = vsel %vm791_vm7, %v750_v30, %v748_v26 }
 0x49c   :  { %v794_v58 = vadd.f32 %v793_v56, %v792_v57 }
 0x49e   :  { %v799_v59 = vrot.slane %v794_v58, %v2376_v33  ;;  %v803_v60 = vrot.slane %v794_v58, %v2379_v34 }
 0x4a0   :  { %v806_v61 = vsub.f32 %v2471_v27, %v799_v59  ;;  %v807_v62 = vsub.f32 %v2473_v29, %v803_v60 }
 0x4a2   :  { %v808_v63 = vmax.f32 %v806_v61, 0.0  ;;  %v809_v35 = vmax.f32 %v807_v62, 0.0 }
 0x4a4   :  { %v810_v36 = vmul.f32 %v808_v63, %v808_v63  ;;  %v811_v0 = vmul.f32 %v809_v35, %v809_v35 }
 0x4a6   :  { %v814_v1 = vcombine.low %v810_v36, %v811_v0 }
 0x4a8   :  { %v821_v37 = vrot.slane %v814_v1, %v2400_v42 }
 0x4aa   :  { %v828_v38 = vrot.slane %v821_v37, %v2400_v42 }
 0x4ac   :  { %v830_v39 = vsel %vm615_vm4, %v828_v38, 0.0 }
 0x4ad   :  { %831 = vadd.xlane.f32.xlu1 %v830_v39  ;;  %v969_v39 = vmul.f32 0.5, %v925_v52 }
 0x536   :  { %v832_v2 = vpop.xlane.xlu1 %831 }
 0x537   :  { %v2133_v40 = vadd.f32 -1.0, %v832_v2 }
 0x539   :  { %v834_v3 = vmul.f32 %v2133_v40, %v2494_v6 }
 0x53b   :  { %vm835_vm8 = vcmp.ge.f32.partialorder %v834_v3, 0.0 }
 0x53c   :  { %v836_v5 = vsel %vm835_vm8, %v794_v58, %v792_v57 }
 0x53d   :  { %v838_v7 = vadd.f32 %v837_v4, %v836_v5 }
 0x53f   :  { %v843_v8 = vrot.slane %v838_v7, %v2376_v33  ;;  %v847_v9 = vrot.slane %v838_v7, %v2379_v34 }
 0x541   :  { %v850_v10 = vsub.f32 %v2471_v27, %v843_v8  ;;  %v851_v11 = vsub.f32 %v2473_v29, %v847_v9 }
 0x543   :  { %v852_v12 = vmax.f32 %v850_v10, 0.0  ;;  %v853_v13 = vmax.f32 %v851_v11, 0.0 }
 0x545   :  { %v854_v14 = vmul.f32 %v852_v12, %v852_v12  ;;  %v855_v15 = vmul.f32 %v853_v13, %v853_v13 }
 0x547   :  { %v858_v16 = vcombine.low %v854_v14, %v855_v15 }
 0x549   :  { %v865_v17 = vrot.slane %v858_v16, %v2400_v42 }
 0x54b   :  { %v872_v18 = vrot.slane %v865_v17, %v2400_v42 }
 0x54d   :  { %v874_v19 = vsel %vm615_vm4, %v872_v18, 0.0 }
 0x54e   :  { %875 = vadd.xlane.f32.xlu0 %v874_v19  ;;  %v1013_v19 = vmul.f32 0.5, %v969_v39 }
 0x5d7   :  { %v876_v28 = vpop.xlane.xlu0 %875 }
 0x5d8   :  { %v2134_v20 = vadd.f32 -1.0, %v876_v28 }
 0x5da   :  { %v878_v21 = vmul.f32 %v2134_v20, %v2494_v6 }
 0x5dc   :  { %vm879_vm9 = vcmp.ge.f32.partialorder %v878_v21, 0.0 }
 0x5dd   :  { %v880_v22 = vsel %vm879_vm9, %v838_v7, %v836_v5 }
 0x5de   :  { %v882_v23 = vadd.f32 %v881_v31, %v880_v22 }
 0x5e0   :  { %v887_v24 = vrot.slane %v882_v23, %v2376_v33  ;;  %v891_v25 = vrot.slane %v882_v23, %v2379_v34 }
 0x5e2   :  { %v894_v26 = vsub.f32 %v2471_v27, %v887_v24  ;;  %v895_v30 = vsub.f32 %v2473_v29, %v891_v25 }
 0x5e4   :  { %v896_v32 = vmax.f32 %v894_v26, 0.0  ;;  %v897_v41 = vmax.f32 %v895_v30, 0.0 }
 0x5e6   :  { %v898_v43 = vmul.f32 %v896_v32, %v896_v32  ;;  %v899_v44 = vmul.f32 %v897_v41, %v897_v41 }
 0x5e8   :  { %v902_v45 = vcombine.low %v898_v43, %v899_v44 }
 0x5ea   :  { %v909_v46 = vrot.slane %v902_v45, %v2400_v42 }
 0x5ec   :  { %v916_v47 = vrot.slane %v909_v46, %v2400_v42 }
 0x5ee   :  { %v918_v48 = vsel %vm615_vm4, %v916_v47, 0.0 }
 0x5ef   :  { %919 = vadd.xlane.f32.xlu1 %v918_v48  ;;  %v1057_v48 = vmul.f32 0.5, %v1013_v19 }
 0x678   :  { %v920_v49 = vpop.xlane.xlu1 %919 }
 0x679   :  { %v2135_v50 = vadd.f32 -1.0, %v920_v49 }
 0x67b   :  { %v922_v51 = vmul.f32 %v2135_v50, %v2494_v6 }
 0x67d   :  { %vm923_vm10 = vcmp.ge.f32.partialorder %v922_v51, 0.0 }
 0x67e   :  { %v924_v53 = vsel %vm923_vm10, %v882_v23, %v880_v22 }
 0x67f   :  { %v926_v54 = vadd.f32 %v925_v52, %v924_v53 }
 0x681   :  { %v931_v55 = vrot.slane %v926_v54, %v2376_v33  ;;  %v935_v56 = vrot.slane %v926_v54, %v2379_v34 }
 0x683   :  { %v938_v57 = vsub.f32 %v2471_v27, %v931_v55  ;;  %v939_v58 = vsub.f32 %v2473_v29, %v935_v56 }
 0x685   :  { %v940_v59 = vmax.f32 %v938_v57, 0.0  ;;  %v941_v60 = vmax.f32 %v939_v58, 0.0 }
 0x687   :  { %v942_v61 = vmul.f32 %v940_v59, %v940_v59  ;;  %v943_v62 = vmul.f32 %v941_v60, %v941_v60 }
 0x689   :  { %v946_v63 = vcombine.low %v942_v61, %v943_v62 }
 0x68b   :  { %v953_v35 = vrot.slane %v946_v63, %v2400_v42 }
 0x68d   :  { %v960_v36 = vrot.slane %v953_v35, %v2400_v42 }
 0x68f   :  { %v962_v0 = vsel %vm615_vm4, %v960_v36, 0.0 }
 0x690   :  { %963 = vadd.xlane.f32.xlu0 %v962_v0  ;;  %v1101_v0 = vmul.f32 0.5, %v1057_v48 }
 0x719   :  { %v964_v1 = vpop.xlane.xlu0 %963 }
 0x71a   :  { %v2136_v37 = vadd.f32 -1.0, %v964_v1 }
 0x71c   :  { %v966_v38 = vmul.f32 %v2136_v37, %v2494_v6 }
 0x71e   :  { %vm967_vm11 = vcmp.ge.f32.partialorder %v966_v38, 0.0 }
 0x71f   :  { %v968_v2 = vsel %vm967_vm11, %v926_v54, %v924_v53 }
 0x720   :  { %v970_v40 = vadd.f32 %v969_v39, %v968_v2 }
 0x722   :  { %v975_v3 = vrot.slane %v970_v40, %v2376_v33  ;;  %v979_v4 = vrot.slane %v970_v40, %v2379_v34 }
 0x724   :  { %v982_v5 = vsub.f32 %v2471_v27, %v975_v3  ;;  %v983_v7 = vsub.f32 %v2473_v29, %v979_v4 }
 0x726   :  { %v984_v8 = vmax.f32 %v982_v5, 0.0  ;;  %v985_v9 = vmax.f32 %v983_v7, 0.0 }
 0x728   :  { %v986_v10 = vmul.f32 %v984_v8, %v984_v8  ;;  %v987_v11 = vmul.f32 %v985_v9, %v985_v9 }
 0x72a   :  { %v990_v12 = vcombine.low %v986_v10, %v987_v11 }
 0x72c   :  { %v997_v13 = vrot.slane %v990_v12, %v2400_v42 }
 0x72e   :  { %v1004_v14 = vrot.slane %v997_v13, %v2400_v42 }
 0x730   :  { %v1006_v15 = vsel %vm615_vm4, %v1004_v14, 0.0 }
 0x731   :  { %1007 = vadd.xlane.f32.xlu1 %v1006_v15  ;;  %v1145_v15 = vmul.f32 0.5, %v1101_v0 }
 0x7ba   :  { %v1008_v16 = vpop.xlane.xlu1 %1007 }
 0x7bb   :  { %v2137_v17 = vadd.f32 -1.0, %v1008_v16 }
 0x7bd   :  { %v1010_v18 = vmul.f32 %v2137_v17, %v2494_v6 }
 0x7bf   :  { %vm1011_vm12 = vcmp.ge.f32.partialorder %v1010_v18, 0.0 }
 0x7c0   :  { %v1012_v28 = vsel %vm1011_vm12, %v970_v40, %v968_v2 }
 0x7c1   :  { %v1014_v20 = vadd.f32 %v1013_v19, %v1012_v28 }
 0x7c3   :  { %v1019_v21 = vrot.slane %v1014_v20, %v2376_v33  ;;  %v1023_v31 = vrot.slane %v1014_v20, %v2379_v34 }
 0x7c5   :  { %v1026_v22 = vsub.f32 %v2471_v27, %v1019_v21  ;;  %v1027_v23 = vsub.f32 %v2473_v29, %v1023_v31 }
 0x7c7   :  { %v1028_v24 = vmax.f32 %v1026_v22, 0.0  ;;  %v1029_v25 = vmax.f32 %v1027_v23, 0.0 }
 0x7c9   :  { %v1030_v26 = vmul.f32 %v1028_v24, %v1028_v24  ;;  %v1031_v30 = vmul.f32 %v1029_v25, %v1029_v25 }
 0x7cb   :  { %v1034_v32 = vcombine.low %v1030_v26, %v1031_v30 }
 0x7cd   :  { %v1041_v41 = vrot.slane %v1034_v32, %v2400_v42 }
 0x7cf   :  { %v1048_v43 = vrot.slane %v1041_v41, %v2400_v42 }
 0x7d1   :  { %v1050_v44 = vsel %vm615_vm4, %v1048_v43, 0.0 }
 0x7d2   :  { %1051 = vadd.xlane.f32.xlu0 %v1050_v44  ;;  %v1189_v44 = vmul.f32 0.5, %v1145_v15 }
 0x85b   :  { %v1052_v45 = vpop.xlane.xlu0 %1051 }
 0x85c   :  { %v2138_v46 = vadd.f32 -1.0, %v1052_v45 }
 0x85e   :  { %v1054_v47 = vmul.f32 %v2138_v46, %v2494_v6 }
 0x860   :  { %vm1055_vm13 = vcmp.ge.f32.partialorder %v1054_v47, 0.0 }
 0x861   :  { %v1056_v49 = vsel %vm1055_vm13, %v1014_v20, %v1012_v28 }
 0x862   :  { %v1058_v50 = vadd.f32 %v1057_v48, %v1056_v49 }
 0x864   :  { %v1063_v51 = vrot.slane %v1058_v50, %v2376_v33  ;;  %v1067_v52 = vrot.slane %v1058_v50, %v2379_v34 }
 0x866   :  { %v1070_v53 = vsub.f32 %v2471_v27, %v1063_v51  ;;  %v1071_v54 = vsub.f32 %v2473_v29, %v1067_v52 }
 0x868   :  { %v1072_v55 = vmax.f32 %v1070_v53, 0.0  ;;  %v1073_v56 = vmax.f32 %v1071_v54, 0.0 }
 0x86a   :  { %v1074_v57 = vmul.f32 %v1072_v55, %v1072_v55  ;;  %v1075_v58 = vmul.f32 %v1073_v56, %v1073_v56 }
 0x86c   :  { %v1078_v59 = vcombine.low %v1074_v57, %v1075_v58 }
 0x86e   :  { %v1085_v60 = vrot.slane %v1078_v59, %v2400_v42 }
 0x870   :  { %v1092_v61 = vrot.slane %v1085_v60, %v2400_v42 }
 0x872   :  { %v1094_v62 = vsel %vm615_vm4, %v1092_v61, 0.0 }
 0x873   :  { %1095 = vadd.xlane.f32.xlu1 %v1094_v62  ;;  %v1233_v62 = vmul.f32 0.5, %v1189_v44 }
 0x8fc   :  { %v1096_v63 = vpop.xlane.xlu1 %1095 }
 0x8fd   :  { %v2139_v35 = vadd.f32 -1.0, %v1096_v63 }
 0x8ff   :  { %v1098_v36 = vmul.f32 %v2139_v35, %v2494_v6 }
 0x901   :  { %vm1099_vm14 = vcmp.ge.f32.partialorder %v1098_v36, 0.0 }
 0x902   :  { %v1100_v1 = vsel %vm1099_vm14, %v1058_v50, %v1056_v49 }
 0x903   :  { %v1102_v37 = vadd.f32 %v1101_v0, %v1100_v1 }
 0x905   :  { %v1107_v38 = vrot.slane %v1102_v37, %v2376_v33  ;;  %v1111_v39 = vrot.slane %v1102_v37, %v2379_v34 }
 0x907   :  { %v1114_v2 = vsub.f32 %v2471_v27, %v1107_v38  ;;  %v1115_v40 = vsub.f32 %v2473_v29, %v1111_v39 }
 0x909   :  { %v1116_v3 = vmax.f32 %v1114_v2, 0.0  ;;  %v1117_v4 = vmax.f32 %v1115_v40, 0.0 }
 0x90b   :  { %v1118_v5 = vmul.f32 %v1116_v3, %v1116_v3  ;;  %v1119_v7 = vmul.f32 %v1117_v4, %v1117_v4 }
 0x90d   :  { %v1122_v8 = vcombine.low %v1118_v5, %v1119_v7 }
 0x90f   :  { %v1129_v9 = vrot.slane %v1122_v8, %v2400_v42 }
 0x911   :  { %v1136_v10 = vrot.slane %v1129_v9, %v2400_v42 }
 0x913   :  { %v1138_v11 = vsel %vm615_vm4, %v1136_v10, 0.0 }
 0x914   :  { %1139 = vadd.xlane.f32.xlu0 %v1138_v11  ;;  %v1277_v11 = vmul.f32 0.5, %v1233_v62 }
 0x99d   :  { %v1140_v12 = vpop.xlane.xlu0 %1139 }
 0x99e   :  { %v2140_v13 = vadd.f32 -1.0, %v1140_v12 }
 0x9a0   :  { %v1142_v14 = vmul.f32 %v2140_v13, %v2494_v6 }
 0x9a2   :  { %vm1143_vm15 = vcmp.ge.f32.partialorder %v1142_v14, 0.0 }
 0x9a3   :  { %v1144_v16 = vsel %vm1143_vm15, %v1102_v37, %v1100_v1 }
 0x9a4   :  { %v1146_v17 = vadd.f32 %v1145_v15, %v1144_v16 }
 0x9a6   :  { %v1151_v18 = vrot.slane %v1146_v17, %v2376_v33  ;;  %v1155_v19 = vrot.slane %v1146_v17, %v2379_v34 }
 0x9a8   :  { %v1158_v28 = vsub.f32 %v2471_v27, %v1151_v18  ;;  %v1159_v20 = vsub.f32 %v2473_v29, %v1155_v19 }
 0x9aa   :  { %v1160_v21 = vmax.f32 %v1158_v28, 0.0  ;;  %v1161_v31 = vmax.f32 %v1159_v20, 0.0 }
 0x9ac   :  { %v1162_v22 = vmul.f32 %v1160_v21, %v1160_v21  ;;  %v1163_v23 = vmul.f32 %v1161_v31, %v1161_v31 }
 0x9ae   :  { %v1166_v24 = vcombine.low %v1162_v22, %v1163_v23 }
 0x9b0   :  { %v1173_v25 = vrot.slane %v1166_v24, %v2400_v42 }
 0x9b2   :  { %v1180_v26 = vrot.slane %v1173_v25, %v2400_v42 }
 0x9b4   :  { %v1182_v30 = vsel %vm615_vm4, %v1180_v26, 0.0 }
 0x9b5   :  { %1183 = vadd.xlane.f32.xlu1 %v1182_v30  ;;  %v1321_v30 = vmul.f32 0.5, %v1277_v11 }
 0xa3e   :  { %v1184_v32 = vpop.xlane.xlu1 %1183 }
 0xa3f   :  { %v2141_v41 = vadd.f32 -1.0, %v1184_v32 }
 0xa41   :  { %v1186_v43 = vmul.f32 %v2141_v41, %v2494_v6 }
 0xa43   :  { %vm1187_vm0 = vcmp.ge.f32.partialorder %v1186_v43, 0.0 }
 0xa44   :  { %v1188_v45 = vsel %vm1187_vm0, %v1146_v17, %v1144_v16 }
 0xa45   :  { %v1190_v46 = vadd.f32 %v1189_v44, %v1188_v45 }
 0xa47   :  { %v1195_v47 = vrot.slane %v1190_v46, %v2376_v33  ;;  %v1199_v48 = vrot.slane %v1190_v46, %v2379_v34 }
 0xa49   :  { %v1202_v49 = vsub.f32 %v2471_v27, %v1195_v47  ;;  %v1203_v50 = vsub.f32 %v2473_v29, %v1199_v48 }
 0xa4b   :  { %v1204_v51 = vmax.f32 %v1202_v49, 0.0  ;;  %v1205_v52 = vmax.f32 %v1203_v50, 0.0 }
 0xa4d   :  { %v1206_v53 = vmul.f32 %v1204_v51, %v1204_v51  ;;  %v1207_v54 = vmul.f32 %v1205_v52, %v1205_v52 }
 0xa4f   :  { %v1210_v55 = vcombine.low %v1206_v53, %v1207_v54 }
 0xa51   :  { %v1217_v56 = vrot.slane %v1210_v55, %v2400_v42 }
 0xa53   :  { %v1224_v57 = vrot.slane %v1217_v56, %v2400_v42 }
 0xa55   :  { %v1226_v58 = vsel %vm615_vm4, %v1224_v57, 0.0 }
 0xa56   :  { %1227 = vadd.xlane.f32.xlu0 %v1226_v58  ;;  %v1365_v58 = vmul.f32 0.5, %v1321_v30 }
 0xadf   :  { %v1228_v59 = vpop.xlane.xlu0 %1227 }
 0xae0   :  { %v2142_v60 = vadd.f32 -1.0, %v1228_v59 }
 0xae2   :  { %v1230_v61 = vmul.f32 %v2142_v60, %v2494_v6 }
 0xae4   :  { %vm1231_vm1 = vcmp.ge.f32.partialorder %v1230_v61, 0.0 }
 0xae5   :  { %v1232_v63 = vsel %vm1231_vm1, %v1190_v46, %v1188_v45 }
 0xae6   :  { %v1234_v35 = vadd.f32 %v1233_v62, %v1232_v63 }
 0xae8   :  { %v1239_v36 = vrot.slane %v1234_v35, %v2376_v33  ;;  %v1243_v0 = vrot.slane %v1234_v35, %v2379_v34 }
 0xaea   :  { %v1246_v1 = vsub.f32 %v2471_v27, %v1239_v36  ;;  %v1247_v37 = vsub.f32 %v2473_v29, %v1243_v0 }
 0xaec   :  { %v1248_v38 = vmax.f32 %v1246_v1, 0.0  ;;  %v1249_v39 = vmax.f32 %v1247_v37, 0.0 }
 0xaee   :  { %v1250_v2 = vmul.f32 %v1248_v38, %v1248_v38  ;;  %v1251_v40 = vmul.f32 %v1249_v39, %v1249_v39 }
 0xaf0   :  { %v1254_v3 = vcombine.low %v1250_v2, %v1251_v40 }
 0xaf2   :  { %v1261_v4 = vrot.slane %v1254_v3, %v2400_v42 }
 0xaf4   :  { %v1268_v5 = vrot.slane %v1261_v4, %v2400_v42 }
 0xaf6   :  { %v1270_v7 = vsel %vm615_vm4, %v1268_v5, 0.0 }
 0xaf7   :  { %1271 = vadd.xlane.f32.xlu1 %v1270_v7  ;;  %v1409_v7 = vmul.f32 0.5, %v1365_v58 }
 0xb80   :  { %v1272_v8 = vpop.xlane.xlu1 %1271 }
 0xb81   :  { %v2143_v9 = vadd.f32 -1.0, %v1272_v8 }
 0xb83   :  { %v1274_v10 = vmul.f32 %v2143_v9, %v2494_v6 }
 0xb85   :  { %vm1275_vm2 = vcmp.ge.f32.partialorder %v1274_v10, 0.0 }
 0xb86   :  { %v1276_v12 = vsel %vm1275_vm2, %v1234_v35, %v1232_v63 }
 0xb87   :  { %v1278_v13 = vadd.f32 %v1277_v11, %v1276_v12 }
 0xb89   :  { %v1283_v14 = vrot.slane %v1278_v13, %v2376_v33  ;;  %v1287_v15 = vrot.slane %v1278_v13, %v2379_v34 }
 0xb8b   :  { %v1290_v16 = vsub.f32 %v2471_v27, %v1283_v14  ;;  %v1291_v17 = vsub.f32 %v2473_v29, %v1287_v15 }
 0xb8d   :  { %v1292_v18 = vmax.f32 %v1290_v16, 0.0  ;;  %v1293_v19 = vmax.f32 %v1291_v17, 0.0 }
 0xb8f   :  { %v1294_v28 = vmul.f32 %v1292_v18, %v1292_v18  ;;  %v1295_v20 = vmul.f32 %v1293_v19, %v1293_v19 }
 0xb91   :  { %v1298_v21 = vcombine.low %v1294_v28, %v1295_v20 }
 0xb93   :  { %v1305_v31 = vrot.slane %v1298_v21, %v2400_v42 }
 0xb95   :  { %v1312_v22 = vrot.slane %v1305_v31, %v2400_v42 }
 0xb97   :  { %v1314_v23 = vsel %vm615_vm4, %v1312_v22, 0.0 }
 0xb98   :  { %1315 = vadd.xlane.f32.xlu0 %v1314_v23  ;;  %v1453_v23 = vmul.f32 0.5, %v1409_v7 }
 0xc21   :  { %v1316_v24 = vpop.xlane.xlu0 %1315 }
 0xc22   :  { %v2144_v25 = vadd.f32 -1.0, %v1316_v24 }
 0xc24   :  { %v1318_v26 = vmul.f32 %v2144_v25, %v2494_v6 }
 0xc26   :  { %vm1319_vm3 = vcmp.ge.f32.partialorder %v1318_v26, 0.0 }
 0xc27   :  { %v1320_v32 = vsel %vm1319_vm3, %v1278_v13, %v1276_v12  ;;  %vm2309_vm3 = vmmov 0  }
 0xc28   :  { %v1322_v41 = vadd.f32 %v1321_v30, %v1320_v32 }
 0xc2a   :  { %v1327_v43 = vrot.slane %v1322_v41, %v2376_v33  ;;  %v1331_v44 = vrot.slane %v1322_v41, %v2379_v34 }
 0xc2c   :  { %v1334_v45 = vsub.f32 %v2471_v27, %v1327_v43  ;;  %v1335_v46 = vsub.f32 %v2473_v29, %v1331_v44 }
 0xc2e   :  { %v1336_v47 = vmax.f32 %v1334_v45, 0.0  ;;  %v1337_v48 = vmax.f32 %v1335_v46, 0.0 }
 0xc30   :  { %v1338_v49 = vmul.f32 %v1336_v47, %v1336_v47  ;;  %v1339_v50 = vmul.f32 %v1337_v48, %v1337_v48 }
 0xc32   :  { %v1342_v51 = vcombine.low %v1338_v49, %v1339_v50 }
 0xc34   :  { %v1349_v52 = vrot.slane %v1342_v51, %v2400_v42 }
 0xc36   :  { %v1356_v53 = vrot.slane %v1349_v52, %v2400_v42 }
 0xc38   :  { %v1358_v54 = vsel %vm615_vm4, %v1356_v53, 0.0 }
 0xc39   :  { %1359 = vadd.xlane.f32.xlu1 %v1358_v54  ;;  %v1497_v54 = vmul.f32 0.5, %v1453_v23 }
 0xcc2   :  { %v1360_v55 = vpop.xlane.xlu1 %1359 }
 0xcc3   :  { %v2145_v56 = vadd.f32 -1.0, %v1360_v55 }
 0xcc5   :  { %v1362_v57 = vmul.f32 %v2145_v56, %v2494_v6 }
 0xcc7   :  { %vm1363_vm5 = vcmp.ge.f32.partialorder %v1362_v57, 0.0 }
 0xcc8   :  { %v1364_v59 = vsel %vm1363_vm5, %v1322_v41, %v1320_v32  ;;  %vm2004_vm5 = vcmask 130048  }
 0xcc9   :  { %v1366_v60 = vadd.f32 %v1365_v58, %v1364_v59 }
 0xccb   :  { %v1371_v61 = vrot.slane %v1366_v60, %v2376_v33  ;;  %v1375_v62 = vrot.slane %v1366_v60, %v2379_v34 }
 0xccd   :  { %v1378_v63 = vsub.f32 %v2471_v27, %v1371_v61  ;;  %v1379_v35 = vsub.f32 %v2473_v29, %v1375_v62 }
 0xccf   :  { %v1380_v36 = vmax.f32 %v1378_v63, 0.0  ;;  %v1381_v0 = vmax.f32 %v1379_v35, 0.0 }
 0xcd1   :  { %v1382_v1 = vmul.f32 %v1380_v36, %v1380_v36  ;;  %v1383_v37 = vmul.f32 %v1381_v0, %v1381_v0 }
 0xcd3   :  { %v1386_v38 = vcombine.low %v1382_v1, %v1383_v37 }
 0xcd5   :  { %v1393_v39 = vrot.slane %v1386_v38, %v2400_v42 }
 0xcd7   :  { %v1400_v2 = vrot.slane %v1393_v39, %v2400_v42 }
 0xcd9   :  { %v1402_v40 = vsel %vm615_vm4, %v1400_v2, 0.0 }
 0xcda   :  { %1403 = vadd.xlane.f32.xlu0 %v1402_v40  ;;  %v1541_v40 = vmul.f32 0.5, %v1497_v54 }
 0xd63   :  { %v1404_v3 = vpop.xlane.xlu0 %1403 }
 0xd64   :  { %v2146_v4 = vadd.f32 -1.0, %v1404_v3 }
 0xd66   :  { %v1406_v5 = vmul.f32 %v2146_v4, %v2494_v6 }
 0xd68   :  { %vm1407_vm6 = vcmp.ge.f32.partialorder %v1406_v5, 0.0 }
 0xd69   :  { %v1408_v8 = vsel %vm1407_vm6, %v1366_v60, %v1364_v59 }
 0xd6a   :  { %v1410_v9 = vadd.f32 %v1409_v7, %v1408_v8 }
 0xd6c   :  { %v1415_v10 = vrot.slane %v1410_v9, %v2376_v33  ;;  %v1419_v11 = vrot.slane %v1410_v9, %v2379_v34 }
 0xd6e   :  { %v1422_v12 = vsub.f32 %v2471_v27, %v1415_v10  ;;  %v1423_v13 = vsub.f32 %v2473_v29, %v1419_v11 }
 0xd70   :  { %v1424_v14 = vmax.f32 %v1422_v12, 0.0  ;;  %v1425_v15 = vmax.f32 %v1423_v13, 0.0 }
 0xd72   :  { %v1426_v16 = vmul.f32 %v1424_v14, %v1424_v14  ;;  %v1427_v17 = vmul.f32 %v1425_v15, %v1425_v15 }
 0xd74   :  { %v1430_v18 = vcombine.low %v1426_v16, %v1427_v17 }
 0xd76   :  { %v1437_v19 = vrot.slane %v1430_v18, %v2400_v42 }
 0xd78   :  { %v1444_v28 = vrot.slane %v1437_v19, %v2400_v42 }
 0xd7a   :  { %v1446_v20 = vsel %vm615_vm4, %v1444_v28, 0.0 }
 0xd7b   :  { %1447 = vadd.xlane.f32.xlu1 %v1446_v20  ;;  %v1585_v20 = vmul.f32 0.5, %v1541_v40 }
 0xe04   :  { %v1448_v21 = vpop.xlane.xlu1 %1447 }
 0xe05   :  { %v2147_v31 = vadd.f32 -1.0, %v1448_v21 }
 0xe07   :  { %v1450_v22 = vmul.f32 %v2147_v31, %v2494_v6 }
 0xe09   :  { %vm1451_vm7 = vcmp.ge.f32.partialorder %v1450_v22, 0.0 }
 0xe0a   :  { %v1452_v24 = vsel %vm1451_vm7, %v1410_v9, %v1408_v8 }
 0xe0b   :  { %v1454_v25 = vadd.f32 %v1453_v23, %v1452_v24 }
 0xe0d   :  { %v1459_v26 = vrot.slane %v1454_v25, %v2376_v33  ;;  %v1463_v30 = vrot.slane %v1454_v25, %v2379_v34 }
 0xe0f   :  { %v1466_v32 = vsub.f32 %v2471_v27, %v1459_v26  ;;  %v1467_v41 = vsub.f32 %v2473_v29, %v1463_v30 }
 0xe11   :  { %v1468_v43 = vmax.f32 %v1466_v32, 0.0  ;;  %v1469_v44 = vmax.f32 %v1467_v41, 0.0 }
 0xe13   :  { %v1470_v45 = vmul.f32 %v1468_v43, %v1468_v43  ;;  %v1471_v46 = vmul.f32 %v1469_v44, %v1469_v44 }
 0xe15   :  { %v1474_v47 = vcombine.low %v1470_v45, %v1471_v46 }
 0xe17   :  { %v1481_v48 = vrot.slane %v1474_v47, %v2400_v42 }
 0xe19   :  { %v1488_v49 = vrot.slane %v1481_v48, %v2400_v42 }
 0xe1b   :  { %v1490_v50 = vsel %vm615_vm4, %v1488_v49, 0.0 }
 0xe1c   :  { %1491 = vadd.xlane.f32.xlu0 %v1490_v50  ;;  %v1629_v50 = vmul.f32 0.5, %v1585_v20 }
 0xea5   :  { %v1492_v51 = vpop.xlane.xlu0 %1491 }
 0xea6   :  { %v2148_v52 = vadd.f32 -1.0, %v1492_v51 }
 0xea8   :  { %v1494_v53 = vmul.f32 %v2148_v52, %v2494_v6 }
 0xeaa   :  { %vm1495_vm8 = vcmp.ge.f32.partialorder %v1494_v53, 0.0 }
 0xeab   :  { %v1496_v55 = vsel %vm1495_vm8, %v1454_v25, %v1452_v24 }
 0xeac   :  { %v1498_v56 = vadd.f32 %v1497_v54, %v1496_v55 }
 0xeae   :  { %v1503_v57 = vrot.slane %v1498_v56, %v2376_v33  ;;  %v1507_v58 = vrot.slane %v1498_v56, %v2379_v34 }
 0xeb0   :  { %v1510_v59 = vsub.f32 %v2471_v27, %v1503_v57  ;;  %v1511_v60 = vsub.f32 %v2473_v29, %v1507_v58 }
 0xeb2   :  { %v1512_v61 = vmax.f32 %v1510_v59, 0.0  ;;  %v1513_v62 = vmax.f32 %v1511_v60, 0.0 }
 0xeb4   :  { %v1514_v63 = vmul.f32 %v1512_v61, %v1512_v61  ;;  %v1515_v35 = vmul.f32 %v1513_v62, %v1513_v62 }
 0xeb6   :  { %v1518_v36 = vcombine.low %v1514_v63, %v1515_v35 }
 0xeb8   :  { %v1525_v0 = vrot.slane %v1518_v36, %v2400_v42 }
 0xeba   :  { %v1532_v1 = vrot.slane %v1525_v0, %v2400_v42 }
 0xebc   :  { %v1534_v37 = vsel %vm615_vm4, %v1532_v1, 0.0 }
 0xebd   :  { %1535 = vadd.xlane.f32.xlu1 %v1534_v37  ;;  %v1673_v37 = vmul.f32 0.5, %v1629_v50 }
 0xf46   :  { %v1536_v38 = vpop.xlane.xlu1 %1535 }
 0xf47   :  { %v2149_v39 = vadd.f32 -1.0, %v1536_v38 }
 0xf49   :  { %v1538_v2 = vmul.f32 %v2149_v39, %v2494_v6 }
 0xf4b   :  { %vm1539_vm9 = vcmp.ge.f32.partialorder %v1538_v2, 0.0 }
 0xf4c   :  { %v1540_v3 = vsel %vm1539_vm9, %v1498_v56, %v1496_v55 }
 0xf4d   :  { %v1542_v4 = vadd.f32 %v1541_v40, %v1540_v3 }
 0xf4f   :  { %v1547_v5 = vrot.slane %v1542_v4, %v2376_v33  ;;  %v1551_v7 = vrot.slane %v1542_v4, %v2379_v34 }
 0xf51   :  { %v1554_v8 = vsub.f32 %v2471_v27, %v1547_v5  ;;  %v1555_v9 = vsub.f32 %v2473_v29, %v1551_v7 }
 0xf53   :  { %v1556_v10 = vmax.f32 %v1554_v8, 0.0  ;;  %v1557_v11 = vmax.f32 %v1555_v9, 0.0 }
 0xf55   :  { %v1558_v12 = vmul.f32 %v1556_v10, %v1556_v10  ;;  %v1559_v13 = vmul.f32 %v1557_v11, %v1557_v11 }
 0xf57   :  { %v1562_v14 = vcombine.low %v1558_v12, %v1559_v13 }
 0xf59   :  { %v1569_v15 = vrot.slane %v1562_v14, %v2400_v42 }
 0xf5b   :  { %v1576_v16 = vrot.slane %v1569_v15, %v2400_v42 }
 0xf5d   :  { %v1578_v17 = vsel %vm615_vm4, %v1576_v16, 0.0 }
 0xf5e   :  { %1579 = vadd.xlane.f32.xlu0 %v1578_v17  ;;  %v1717_v17 = vmul.f32 0.5, %v1673_v37 }
 0xfe7   :  { %v1580_v18 = vpop.xlane.xlu0 %1579 }
 0xfe8   :  { %v2150_v19 = vadd.f32 -1.0, %v1580_v18 }
 0xfea   :  { %v1582_v28 = vmul.f32 %v2150_v19, %v2494_v6 }
 0xfec   :  { %vm1583_vm10 = vcmp.ge.f32.partialorder %v1582_v28, 0.0 }
 0xfed   :  { %v1584_v21 = vsel %vm1583_vm10, %v1542_v4, %v1540_v3 }
 0xfee   :  { %v1586_v31 = vadd.f32 %v1585_v20, %v1584_v21 }
 0xff0   :  { %v1591_v22 = vrot.slane %v1586_v31, %v2376_v33  ;;  %v1595_v23 = vrot.slane %v1586_v31, %v2379_v34 }
 0xff2   :  { %v1598_v24 = vsub.f32 %v2471_v27, %v1591_v22  ;;  %v1599_v25 = vsub.f32 %v2473_v29, %v1595_v23 }
 0xff4   :  { %v1600_v26 = vmax.f32 %v1598_v24, 0.0  ;;  %v1601_v30 = vmax.f32 %v1599_v25, 0.0 }
 0xff6   :  { %v1602_v32 = vmul.f32 %v1600_v26, %v1600_v26  ;;  %v1603_v41 = vmul.f32 %v1601_v30, %v1601_v30 }
 0xff8   :  { %v1606_v43 = vcombine.low %v1602_v32, %v1603_v41 }
 0xffa   :  { %v1613_v44 = vrot.slane %v1606_v43, %v2400_v42 }
 0xffc   :  { %v1620_v45 = vrot.slane %v1613_v44, %v2400_v42 }
 0xffe   :  { %v1622_v46 = vsel %vm615_vm4, %v1620_v45, 0.0 }
 0xfff   :  { %1623 = vadd.xlane.f32.xlu1 %v1622_v46  ;;  %v1761_v46 = vmul.f32 0.5, %v1717_v17 }
0x1088   :  { %v1624_v47 = vpop.xlane.xlu1 %1623 }
0x1089   :  { %v2151_v48 = vadd.f32 -1.0, %v1624_v47 }
0x108b   :  { %v1626_v49 = vmul.f32 %v2151_v48, %v2494_v6 }
0x108d   :  { %vm1627_vm11 = vcmp.ge.f32.partialorder %v1626_v49, 0.0 }
0x108e   :  { %v1628_v51 = vsel %vm1627_vm11, %v1586_v31, %v1584_v21 }
0x108f   :  { %v1630_v52 = vadd.f32 %v1629_v50, %v1628_v51 }
0x1091   :  { %v1635_v53 = vrot.slane %v1630_v52, %v2376_v33  ;;  %v1639_v54 = vrot.slane %v1630_v52, %v2379_v34 }
0x1093   :  { %v1642_v55 = vsub.f32 %v2471_v27, %v1635_v53  ;;  %v1643_v56 = vsub.f32 %v2473_v29, %v1639_v54 }
0x1095   :  { %v1644_v57 = vmax.f32 %v1642_v55, 0.0  ;;  %v1645_v58 = vmax.f32 %v1643_v56, 0.0 }
0x1097   :  { %v1646_v59 = vmul.f32 %v1644_v57, %v1644_v57  ;;  %v1647_v60 = vmul.f32 %v1645_v58, %v1645_v58 }
0x1099   :  { %v1650_v61 = vcombine.low %v1646_v59, %v1647_v60 }
0x109b   :  { %v1657_v62 = vrot.slane %v1650_v61, %v2400_v42 }
0x109d   :  { %v1664_v63 = vrot.slane %v1657_v62, %v2400_v42 }
0x109f   :  { %v1666_v35 = vsel %vm615_vm4, %v1664_v63, 0.0 }
0x10a0   :  { %1667 = vadd.xlane.f32.xlu0 %v1666_v35  ;;  %v1805_v35 = vmul.f32 0.5, %v1761_v46 }
0x1129   :  { %v1668_v36 = vpop.xlane.xlu0 %1667 }
0x112a   :  { %v2152_v0 = vadd.f32 -1.0, %v1668_v36 }
0x112c   :  { %v1670_v1 = vmul.f32 %v2152_v0, %v2494_v6 }
0x112e   :  { %vm1671_vm12 = vcmp.ge.f32.partialorder %v1670_v1, 0.0 }
0x112f   :  { %v1672_v38 = vsel %vm1671_vm12, %v1630_v52, %v1628_v51 }
0x1130   :  { %v1674_v39 = vadd.f32 %v1673_v37, %v1672_v38 }
0x1132   :  { %v1679_v2 = vrot.slane %v1674_v39, %v2376_v33  ;;  %v1683_v40 = vrot.slane %v1674_v39, %v2379_v34 }
0x1134   :  { %v1686_v3 = vsub.f32 %v2471_v27, %v1679_v2  ;;  %v1687_v4 = vsub.f32 %v2473_v29, %v1683_v40 }
0x1136   :  { %v1688_v5 = vmax.f32 %v1686_v3, 0.0  ;;  %v1689_v7 = vmax.f32 %v1687_v4, 0.0 }
0x1138   :  { %v1690_v8 = vmul.f32 %v1688_v5, %v1688_v5  ;;  %v1691_v9 = vmul.f32 %v1689_v7, %v1689_v7 }
0x113a   :  { %v1694_v10 = vcombine.low %v1690_v8, %v1691_v9 }
0x113c   :  { %v1701_v11 = vrot.slane %v1694_v10, %v2400_v42 }
0x113e   :  { %v1708_v12 = vrot.slane %v1701_v11, %v2400_v42 }
0x1140   :  { %v1710_v13 = vsel %vm615_vm4, %v1708_v12, 0.0 }
0x1141   :  { %1711 = vadd.xlane.f32.xlu1 %v1710_v13  ;;  %v1849_v13 = vmul.f32 0.5, %v1805_v35 }
0x11ca   :  { %v1712_v14 = vpop.xlane.xlu1 %1711 }
0x11cb   :  { %v2153_v15 = vadd.f32 -1.0, %v1712_v14 }
0x11cd   :  { %v1714_v16 = vmul.f32 %v2153_v15, %v2494_v6 }
0x11cf   :  { %vm1715_vm13 = vcmp.ge.f32.partialorder %v1714_v16, 0.0 }
0x11d0   :  { %v1716_v18 = vsel %vm1715_vm13, %v1674_v39, %v1672_v38 }
0x11d1   :  { %v1718_v19 = vadd.f32 %v1717_v17, %v1716_v18 }
0x11d3   :  { %v1723_v28 = vrot.slane %v1718_v19, %v2376_v33  ;;  %v1727_v20 = vrot.slane %v1718_v19, %v2379_v34 }
0x11d5   :  { %v1730_v21 = vsub.f32 %v2471_v27, %v1723_v28  ;;  %v1731_v31 = vsub.f32 %v2473_v29, %v1727_v20 }
0x11d7   :  { %v1732_v22 = vmax.f32 %v1730_v21, 0.0  ;;  %v1733_v23 = vmax.f32 %v1731_v31, 0.0 }
0x11d9   :  { %v1734_v24 = vmul.f32 %v1732_v22, %v1732_v22  ;;  %v1735_v25 = vmul.f32 %v1733_v23, %v1733_v23 }
0x11db   :  { %v1738_v26 = vcombine.low %v1734_v24, %v1735_v25 }
0x11dd   :  { %v1745_v30 = vrot.slane %v1738_v26, %v2400_v42 }
0x11df   :  { %v1752_v32 = vrot.slane %v1745_v30, %v2400_v42 }
0x11e1   :  { %v1754_v41 = vsel %vm615_vm4, %v1752_v32, 0.0 }
0x11e2   :  { %1755 = vadd.xlane.f32.xlu0 %v1754_v41  ;;  %v1893_v41 = vmul.f32 0.5, %v1849_v13 }
0x126b   :  { %v1756_v43 = vpop.xlane.xlu0 %1755 }
0x126c   :  { %v2154_v44 = vadd.f32 -1.0, %v1756_v43 }
0x126e   :  { %v1758_v45 = vmul.f32 %v2154_v44, %v2494_v6 }
0x1270   :  { %vm1759_vm14 = vcmp.ge.f32.partialorder %v1758_v45, 0.0 }
0x1271   :  { %v1760_v47 = vsel %vm1759_vm14, %v1718_v19, %v1716_v18 }
0x1272   :  { %v1762_v48 = vadd.f32 %v1761_v46, %v1760_v47 }
0x1274   :  { %v1767_v49 = vrot.slane %v1762_v48, %v2376_v33  ;;  %v1771_v50 = vrot.slane %v1762_v48, %v2379_v34 }
0x1276   :  { %v1774_v51 = vsub.f32 %v2471_v27, %v1767_v49  ;;  %v1775_v52 = vsub.f32 %v2473_v29, %v1771_v50 }
0x1278   :  { %v1776_v53 = vmax.f32 %v1774_v51, 0.0  ;;  %v1777_v54 = vmax.f32 %v1775_v52, 0.0 }
0x127a   :  { %v1778_v55 = vmul.f32 %v1776_v53, %v1776_v53  ;;  %v1779_v56 = vmul.f32 %v1777_v54, %v1777_v54 }
0x127c   :  { %v1782_v57 = vcombine.low %v1778_v55, %v1779_v56 }
0x127e   :  { %v1789_v58 = vrot.slane %v1782_v57, %v2400_v42 }
0x1280   :  { %v1796_v59 = vrot.slane %v1789_v58, %v2400_v42 }
0x1282   :  { %v1798_v60 = vsel %vm615_vm4, %v1796_v59, 0.0 }
0x1283   :  { %1799 = vadd.xlane.f32.xlu1 %v1798_v60  ;;  %v1937_v60 = vmul.f32 0.5, %v1893_v41 }
0x130c   :  { %v1800_v61 = vpop.xlane.xlu1 %1799 }
0x130d   :  { %v2155_v62 = vadd.f32 -1.0, %v1800_v61 }
0x130f   :  { %v1802_v63 = vmul.f32 %v2155_v62, %v2494_v6 }
0x1311   :  { %vm1803_vm15 = vcmp.ge.f32.partialorder %v1802_v63, 0.0 }
0x1312   :  { %v1804_v36 = vsel %vm1803_vm15, %v1762_v48, %v1760_v47 }
0x1313   :  { %v1806_v0 = vadd.f32 %v1805_v35, %v1804_v36 }
0x1315   :  { %v1811_v1 = vrot.slane %v1806_v0, %v2376_v33  ;;  %v1815_v37 = vrot.slane %v1806_v0, %v2379_v34 }
0x1317   :  { %v1818_v38 = vsub.f32 %v2471_v27, %v1811_v1  ;;  %v1819_v39 = vsub.f32 %v2473_v29, %v1815_v37 }
0x1319   :  { %v1820_v2 = vmax.f32 %v1818_v38, 0.0  ;;  %v1821_v40 = vmax.f32 %v1819_v39, 0.0 }
0x131b   :  { %v1822_v3 = vmul.f32 %v1820_v2, %v1820_v2  ;;  %v1823_v4 = vmul.f32 %v1821_v40, %v1821_v40 }
0x131d   :  { %v1826_v5 = vcombine.low %v1822_v3, %v1823_v4  ;;  %v2209_v4 = vld [vmem:[#allocation5] sm:$0xff]  }
0x131f   :  { %v1833_v7 = vrot.slane %v1826_v5, %v2400_v42  ;;  %v2308_v5 = vmov 0.0  }
0x1320   :  { %2179 = vmatprep.subr.bf16.mxu1 %v2308_v5  ;;  %2181 = vmatprep.mubr.msk.bf16.mxu1 %vm2309_vm3, %v2308_v5 }
0x1321   :  { %v1840_v8 = vrot.slane %v1833_v7, %v2400_v42  ;;  %2180 = vmatpush3.bf16.msra.mxu1 %v2209_v4 }
0x1322   :  { %2185 = vmatprep.subr.bf16.mxu1 %v2308_v5 }
0x1323   :  { %v1842_v9 = vsel %vm615_vm4, %v1840_v8, 0.0 }
0x1324   :  { %1843 = vadd.xlane.f32.xlu0 %v1842_v9  ;;  %v2210_v9 = vld [vmem:[#allocation5 + $0x8] sm:$0xff]  }
0x13ad   :  { %v1844_v10 = vpop.xlane.xlu0 %1843 }
0x13ae   :  { %v2156_v11 = vadd.f32 -1.0, %v1844_v10 }
0x13b0   :  { %v1846_v12 = vmul.f32 %v2156_v11, %v2494_v6 }
0x13b2   :  { %vm1847_vm0 = vcmp.ge.f32.partialorder %v1846_v12, 0.0 }
0x13b3   :  { %v1848_v14 = vsel %vm1847_vm0, %v1806_v0, %v1804_v36 }
0x13b4   :  { %v1850_v15 = vadd.f32 %v1849_v13, %v1848_v14 }
0x13b6   :  { %v1855_v16 = vrot.slane %v1850_v15, %v2376_v33  ;;  %v1859_v17 = vrot.slane %v1850_v15, %v2379_v34 }
0x13b8   :  { %v1862_v18 = vsub.f32 %v2471_v27, %v1855_v16  ;;  %v1863_v19 = vsub.f32 %v2473_v29, %v1859_v17 }
0x13ba   :  { %v1864_v28 = vmax.f32 %v1862_v18, 0.0  ;;  %v1865_v20 = vmax.f32 %v1863_v19, 0.0 }
0x13bc   :  { %v1866_v21 = vmul.f32 %v1864_v28, %v1864_v28  ;;  %v1867_v31 = vmul.f32 %v1865_v20, %v1865_v20 }
0x13be   :  { %v1870_v22 = vcombine.low %v1866_v21, %v1867_v31 }
0x13c0   :  { %v1877_v23 = vrot.slane %v1870_v22, %v2400_v42 }
0x13c2   :  { %v1884_v24 = vrot.slane %v1877_v23, %v2400_v42 }
0x13c4   :  { %v1886_v25 = vsel %vm615_vm4, %v1884_v24, 0.0 }
0x13c5   :  { %1887 = vadd.xlane.f32.xlu1 %v1886_v25 }
0x144e   :  { %v1888_v26 = vpop.xlane.xlu1 %1887 }
0x144f   :  { %v2157_v30 = vadd.f32 -1.0, %v1888_v26 }
0x1451   :  { %v1890_v32 = vmul.f32 %v2157_v30, %v2494_v6 }
0x1453   :  { %vm1891_vm1 = vcmp.ge.f32.partialorder %v1890_v32, 0.0 }
0x1454   :  { %v1892_v43 = vsel %vm1891_vm1, %v1850_v15, %v1848_v14 }
0x1455   :  { %v1894_v44 = vadd.f32 %v1893_v41, %v1892_v43 }
0x1457   :  { %v1899_v45 = vrot.slane %v1894_v44, %v2376_v33  ;;  %v1903_v46 = vrot.slane %v1894_v44, %v2379_v34 }
0x1459   :  { %v1906_v47 = vsub.f32 %v2471_v27, %v1899_v45  ;;  %v1907_v48 = vsub.f32 %v2473_v29, %v1903_v46 }
0x145b   :  { %v1908_v49 = vmax.f32 %v1906_v47, 0.0  ;;  %v1909_v50 = vmax.f32 %v1907_v48, 0.0 }
0x145d   :  { %v1910_v51 = vmul.f32 %v1908_v49, %v1908_v49  ;;  %v1911_v52 = vmul.f32 %v1909_v50, %v1909_v50 }
0x145f   :  { %v1914_v53 = vcombine.low %v1910_v51, %v1911_v52 }
0x1461   :  { %v1921_v54 = vrot.slane %v1914_v53, %v2400_v42 }
0x1463   :  { %v1928_v55 = vrot.slane %v1921_v54, %v2400_v42 }
0x1465   :  { %v1930_v56 = vsel %vm615_vm4, %v1928_v55, 0.0 }
0x1466   :  { %1931 = vadd.xlane.f32.xlu0 %v1930_v56 }
0x14ef   :  { %v1932_v57 = vpop.xlane.xlu0 %1931 }
0x14f0   :  { %v2158_v58 = vadd.f32 -1.0, %v1932_v57 }
0x14f2   :  { %v1934_v59 = vmul.f32 %v2158_v58, %v2494_v6 }
0x14f4   :  { %vm1935_vm2 = vcmp.ge.f32.partialorder %v1934_v59, 0.0 }
0x14f5   :  { %v1936_v61 = vsel %vm1935_vm2, %v1894_v44, %v1892_v43 }
0x14f6   :  { %v1938_v62 = vadd.f32 %v1937_v60, %v1936_v61 }
0x14f8   :  { %v1943_v63 = vrot.slane %v1938_v62, %v2376_v33  ;;  %v1947_v35 = vrot.slane %v1938_v62, %v2379_v34 }
0x14fa   :  { %v1950_v36 = vsub.f32 %v2471_v27, %v1943_v63  ;;  %v1951_v0 = vsub.f32 %v2473_v29, %v1947_v35 }
0x14fc   :  { %v1952_v1 = vmax.f32 %v1950_v36, 0.0  ;;  %v1953_v37 = vmax.f32 %v1951_v0, 0.0 }
0x14fe   :  { %v1954_v38 = vmul.f32 %v1952_v1, %v1952_v1  ;;  %v1955_v39 = vmul.f32 %v1953_v37, %v1953_v37 }
0x1500   :  { %v1958_v2 = vcombine.low %v1954_v38, %v1955_v39 }
0x1502   :  { %v1965_v40 = vrot.slane %v1958_v2, %v2400_v42 }
0x1504   :  { %v1972_v6 = vrot.slane %v1965_v40, %v2400_v42 }
0x1506   :  { %v1974_v3 = vsel %vm615_vm4, %v1972_v6, 0.0  ;;  %vm2097_vm4 = vcmask 253952  }
0x1507   :  { %1975 = vadd.xlane.f32.xlu1 %v1974_v3 }
0x1590   :  { %v1976_v27 = vpop.xlane.xlu1 %1975 }
0x1591   :  { %v1981_v29 = vrot.slane %v1976_v27, %v2376_v33  ;;  %v1985_v7 = vrot.slane %v1976_v27, %v2379_v34 }
0x1593   :  { %2211 = vrcp.f32 %v1981_v29 }
0x1594   :  { %2213 = vrcp.f32 %v1985_v7 }
0x15a0   :  { %v2212_v8 = vpop.eup %2211 }
0x15a1   :  { %v1989_v42 = vmul.f32 %v2212_v8, %v1954_v38  ;;  %v2214_v11 = vpop.eup %2213 }
0x15a2   :  { %v1991_v12 = vmul.f32 %v2214_v11, %v1955_v39 }
0x15a3   :  { %v1992_v10 = vpack.c.bf16 %v1989_v42, %v1989_v42 }
0x15a4   :  { %v1993_v13 = vpack.c.bf16 %v1991_v12, %v1991_v12 }
0x15a5   :  { %2182 = vmatmul.mubr.msk.bf16.vlgmr.msra.gmra.mxu1 %vm2004_vm5, %v1992_v10 }
0x15a6   :  { %2186 = vmatpush3.bf16.msra.mxu1 %v2210_v9  ;;  %2187 = vmatprep.mubr.msk.bf16.mxu1 %vm2309_vm3, %v2308_v5 }
0x15ad   :  { %2188 = vmatmul.mubr.msk.bf16.vlgmr.msra.gmra.mxu1 %vm2004_vm5, %v1993_v13 }
0x1665   :  { %v2042_v14 = vpop.f32.mrf.mxu1 }
0x1666   :  { %2098 = vst.msk [vmem:[#allocation8] sm:$0x1] %vm2097_vm4, %v2042_v14 }
0x1667   :  { %v2183_v33 = vpop.f32.mrf.mxu1 }
0x1669   :  { %v2045_v34 = vpop.f32.mrf.mxu1 }
0x166b   :  { %v2184_v15 = vpop.f32.mrf.mxu1 }
0x166d   :  { %v2091_v16 = vpop.f32.mrf.mxu1 }
0x166e   :  { %2099 = vst.msk [vmem:[#allocation8 + $0x1] sm:$0x1] %vm2097_vm4, %v2091_v16 }
0x166f   :  { %v2189_v17 = vpop.f32.mrf.mxu1 }
0x1670   :  { %2286 = shalt.err (!%p2283_p5)
}
0x1671   :  { %s2311_s21 = smov 16   ;;  %s2312_s22 = smov 1   ;;  %v2094_v18 = vpop.f32.mrf.mxu1 }
0x1672   :  { %2111 = dma.vmem_to_hbm [thread:$0]  %s2106_s19, 32, %s2741_s6, [#allocation4], %s2311_s21, %s2311_s21, %s2312_s22  }
0x1673   :  { %v2190_v19 = vpop.f32.mrf.mxu1 }
0x1674   :  { %2299 = dma.done.wait [#allocation4], 32  }
0x1675   :  { %2300 = vsyncadd [#allocation4], 4294967264 }
0x1676   :  { %2115 = vsyncpa [#allocation3], 1 }
0x1677   :  { %2116 = vsyncpa [#allocation6], 1 }
0x1678   :  { %2117 = vsyncpa [#allocation4], 1 }

</bundles_post_ra>
